<compile_context>
chip_gen: v6e
topology: v6e:2x2x1
jax: 0.10.0
libtpu: 0.0.40
codegen_flags: <defaults>
</compile_context>

<pallas_src>
import math

import jax
import jax.numpy as jnp
from jax.experimental import pallas as pl
from jax.experimental.pallas import tpu as pltpu


# ----------------------------- config (small, deterministic) -----------------------------
BATCH = 2
SEQ = 8
HIDDEN = 32
NUM_HEADS = 1                 # required by the distance matmul (see note above)
INTERMEDIATE = 64
DISTANCE_TYPE = 8
NUM_LAYERS = 2
LAYER_NORM_EPS = 1e-12
QKV_W = 128                   # fused projection width: [q | k | v | q.dist1] = 3H+1, padded to 128
LANES = 128
NEG_INF = -1e9                # cross-batch fill for the flattened block-diagonal attention


# ----------------------------- in-kernel helpers (f32 elementwise) -----------------------------
def _layernorm(x, gamma, beta):
    mu = jnp.mean(x, axis=-1, keepdims=True)
    var = jnp.mean((x - mu) ** 2, axis=-1, keepdims=True)
    return (x - mu) * jax.lax.rsqrt(var + LAYER_NORM_EPS) * gamma + beta


def _gelu_tanh(x):
    # TODO(synk): exact erf-based 'gelu' (HF BERT default act) has no guaranteed Mosaic lowering;
    # using the tanh ('gelu_new') approximation, which stays on the VPU/EUP.
    return 0.5 * x * (1.0 + jnp.tanh(0.7978845608028654 * (x + 0.044715 * x * x * x)))


# ----------------------------- fused two-layer encoder kernel -----------------------------
def _encoder_kernel(x_ref, maskrel_ref, qkvw_ref, aow_ref, iw_ref, ow_ref, vec_ref, out_ref):
    x = x_ref[...]                                   # [BS, H] f32
    add_mask = maskrel_ref[0]                        # [BS, BS] additive mask (attn + cross-batch)
    rel_is_one = maskrel_ref[1]                      # [BS, BS] 1.0 where same batch AND rel == 1

    BS, H = x.shape
    I = iw_ref.shape[2]
    n_layers = qkvw_ref.shape[0]

    for l in range(n_layers):                        # static unroll over the encoder layers
        vec = vec_ref[l]                             # [8, 128] packed small per-layer vectors (f32)

        # fused [q/sqrt(d) | k | v | (q.dist1)/sqrt(d)] projection; bf16 operands, f32 accumulate
        qkv = jnp.dot(x.astype(jnp.bfloat16), qkvw_ref[l],
                      preferred_element_type=jnp.float32) + vec[0:1, :]      # [BS, 128]
        q = qkv[:, 0:H]                              # already scaled by 1/sqrt(head_size)
        k = qkv[:, H:2 * H]
        v = qkv[:, 2 * H:3 * H]
        qd1 = qkv[:, 3 * H:3 * H + 1]                # (q . distance_vector[1]) / sqrt(d), [BS, 1]

        # block-diagonal attention over the flattened batch*seq rows (BS <= 128 lanes)
        scores = jax.lax.dot_general(
            q.astype(jnp.bfloat16), k.astype(jnp.bfloat16),
            (((1,), (1,)), ((), ())), preferred_element_type=jnp.float32)    # [BS, BS]
        scores = scores + rel_is_one * qd1 + add_mask

        # softmax over keys (f32); attention dropout = identity (eval); head_mask is None
        m = jnp.max(scores, axis=-1, keepdims=True)
        e = jnp.exp(scores - m)
        probs = e * pl.reciprocal(jnp.sum(e, axis=-1, keepdims=True), approx=True)

        ctx = jnp.dot(probs.astype(jnp.bfloat16), v.astype(jnp.bfloat16),
                      preferred_element_type=jnp.float32)                    # [BS, H]

        # BertSelfOutput: dense + (dropout=id) + LayerNorm(residual)
        attn = jnp.dot(ctx.astype(jnp.bfloat16), aow_ref[l],
                       preferred_element_type=jnp.float32) + vec[1:2, 0:H]
        h1 = _layernorm(attn + x, vec[2:3, 0:H], vec[3:4, 0:H])

        # BertIntermediate: dense + gelu
        inter = _gelu_tanh(jnp.dot(h1.astype(jnp.bfloat16), iw_ref[l],
                                   preferred_element_type=jnp.float32) + vec[4:5, 0:I])

        # BertOutput: dense + (dropout=id) + LayerNorm(residual)
        ffn = jnp.dot(inter.astype(jnp.bfloat16), ow_ref[l],
                      preferred_element_type=jnp.float32) + vec[5:6, 0:H]
        x = _layernorm(ffn + h1, vec[6:7, 0:H], vec[7:8, 0:H])

    # ---- lane-dense store: pack [BS, H] -> [BS*H/128, 128] so the final vst is unmasked ----
    # packed[r, c*H + h] = x[c*n_rows + r, h]; the wrapper un-tangles the row interleave.
    # Expressed as selection matmuls (identity placed into lane block c) instead of a reshape.
    n_rows = (BS * H) // LANES
    n_blk = LANES // H
    h_iota = jax.lax.broadcasted_iota(jnp.int32, (H, LANES), 0)
    j_iota = jax.lax.broadcasted_iota(jnp.int32, (H, LANES), 1)
    packed = jnp.zeros((n_rows, LANES), jnp.float32)
    for c in range(n_blk):
        sel = (j_iota == c * H + h_iota).astype(jnp.float32)                 # [H, 128]
        packed = packed + jnp.dot(x[c * n_rows:(c + 1) * n_rows, :], sel,
                                  preferred_element_type=jnp.float32)
    out_ref[...] = packed


# ----------------------------- parameter packing (host/XLA side) -----------------------------
def _pack_params(layer_params):
    """Fuse per-layer weights for the kernel: QKV + distance column in one [H,128] matrix with
    1/sqrt(d) folded into the Q part, bf16 weight casts, and all ten small vectors packed into a
    single [L, 8, 128] f32 operand (rows: qkv_b, ao_b, ln1_g, ln1_b, i_b, o_b, ln2_g, ln2_b)."""
    H, I, W = HIDDEN, INTERMEDIATE, QKV_W
    s = 1.0 / math.sqrt(H)          # attention_head_size == H (single attention head)

    qkvw, aow, iw, ow, vecs = [], [], [], [], []
    for p in layer_params:
        d1 = p["dist_emb"][1]                       # distance_vector.weight[1], [H]
        wq_s = p["q_w"] * s                         # fold 1/sqrt(d) into the query projection
        bq_s = p["q_b"] * s

        w = jnp.zeros((H, W), jnp.float32)
        w = w.at[:, 0:H].set(wq_s)
        w = w.at[:, H:2 * H].set(p["k_w"])
        w = w.at[:, 2 * H:3 * H].set(p["v_w"])
        w = w.at[:, 3 * H].set(wq_s @ d1)           # folded distance dot column
        qkvw.append(w)

        b = jnp.zeros((1, W), jnp.float32)
        b = b.at[:, 0:H].set(bq_s)
        b = b.at[:, H:2 * H].set(p["k_b"])
        b = b.at[:, 2 * H:3 * H].set(p["v_b"])
        b = b.at[0, 3 * H].set(jnp.dot(bq_s[0], d1))

        vec = jnp.zeros((8, W), jnp.float32)
        vec = vec.at[0:1, :].set(b)
        vec = vec.at[1:2, 0:H].set(p["ao_b"])
        vec = vec.at[2:3, 0:H].set(p["ln1_g"])
        vec = vec.at[3:4, 0:H].set(p["ln1_b"])
        vec = vec.at[4:5, 0:I].set(p["i_b"])
        vec = vec.at[5:6, 0:H].set(p["o_b"])
        vec = vec.at[6:7, 0:H].set(p["ln2_g"])
        vec = vec.at[7:8, 0:H].set(p["ln2_b"])
        vecs.append(vec)

        aow.append(p["ao_w"]); iw.append(p["i_w"]); ow.append(p["o_w"])

    to_bf16 = lambda xs: jnp.stack(xs).astype(jnp.bfloat16)
    return to_bf16(qkvw), to_bf16(aow), to_bf16(iw), to_bf16(ow), jnp.stack(vecs)


# ----------------------------- wrapper -----------------------------
def bert_encoder_distance(hidden_states, attention_mask, word_word_relation, layer_params,
                          head_mask=None):
    # output_hidden_states = output_attentions = False -> returns (hidden_states,)
    # head_mask entries are None in this setup -> no per-head scaling.
    del head_mask
    B, S, H = hidden_states.shape
    BS = B * S
    assert (BS * H) % LANES == 0 and LANES % H == 0, "lane-dense output packing assumes B*S*H % 128 == 0"

    qkvw, aow, iw, ow, vecs = _pack_params(layer_params)

    # combined additive mask for the flattened block-diagonal attention + (rel == 1) indicator
    same_b = jnp.arange(B)[:, None, None, None] == jnp.arange(B)[None, None, :, None]   # [B,1,B,1]
    key_mask = attention_mask[:, 0, :][None, None, :, :]                                # [1,1,B,S]
    mask_flat = jnp.broadcast_to(jnp.where(same_b, key_mask, NEG_INF),
                                 (B, S, B, S)).astype(jnp.float32).reshape(BS, BS)
    rel1 = (word_word_relation == 1).astype(jnp.float32)                                # [B,S,S]
    rel_flat = (same_b.astype(jnp.float32) * rel1[:, :, None, :]).reshape(BS, BS)
    maskrel = jnp.stack([mask_flat, rel_flat])                                          # [2,BS,BS]

    n_rows = (BS * H) // LANES
    n_blk = LANES // H

    out = pl.pallas_call(
        _encoder_kernel,
        out_shape=jax.ShapeDtypeStruct((n_rows, LANES), jnp.float32),
        in_specs=[pl.BlockSpec(memory_space=pltpu.MemorySpace.VMEM)] * 7,
        out_specs=pl.BlockSpec(memory_space=pltpu.MemorySpace.VMEM),
    )(hidden_states.reshape(BS, H).astype(jnp.float32), maskrel, qkvw, aow, iw, ow, vecs)

    # un-tangle the lane-packed slab back to (B, S, H) (2 KiB; fuses to ~nothing under jit)
    final = out.reshape(n_rows, n_blk, H).transpose(1, 0, 2).reshape(B, S, H)
    return (final,)


# ----------------------------- deterministic parameter init -----------------------------
def init_layer_params(key, H, I, T):
    ks = jax.random.split(key, 12)

    def w(kk, shape):
        return (0.02 * jax.random.normal(kk, shape)).astype(jnp.float32)

    dist_emb = w(ks[6], (T, H))
    dist_emb = dist_emb.at[0].set(0.0)   # nn.Embedding(padding_idx=0)

    return {
        "q_w": w(ks[0], (H, H)), "q_b": w(ks[1], (1, H)),
        "k_w": w(ks[2], (H, H)), "k_b": w(ks[3], (1, H)),
        "v_w": w(ks[4], (H, H)), "v_b": w(ks[5], (1, H)),
        "dist_emb": dist_emb,
        "ao_w": w(ks[7], (H, H)), "ao_b": w(ks[8], (1, H)),
        "ln1_g": jnp.ones((1, H), jnp.float32), "ln1_b": jnp.zeros((1, H), jnp.float32),
        "i_w": w(ks[9], (H, I)), "i_b": w(ks[10], (1, I)),
        "o_w": w(ks[11], (I, H)), "o_b": jnp.zeros((1, H), jnp.float32),
        "ln2_g": jnp.ones((1, H), jnp.float32), "ln2_b": jnp.zeros((1, H), jnp.float32),
    }


if __name__ == "__main__":
    key = jax.random.PRNGKey(0)
    k_hs, k_rel, k_param = jax.random.split(key, 3)

    hidden_states = jax.random.normal(k_hs, (BATCH, SEQ, HIDDEN), dtype=jnp.float32)
    word_word_relation = jax.random.randint(k_rel, (BATCH, SEQ, SEQ), 0, DISTANCE_TYPE,
                                            dtype=jnp.int32)

    # additive attention mask [B, 1, S]: batch 0 fully visible, batch 1 has last 2 keys masked
    valid = jnp.array([[1] * SEQ, [1] * (SEQ - 2) + [0] * 2], dtype=jnp.float32)
    attention_mask = ((1.0 - valid) * -10000.0).reshape(BATCH, 1, SEQ)

    layer_params = [init_layer_params(jax.random.fold_in(k_param, l), HIDDEN, INTERMEDIATE,
                                      DISTANCE_TYPE)
                    for l in range(NUM_LAYERS)]

    run = jax.jit(bert_encoder_distance)
    outputs = run(hidden_states, attention_mask, word_word_relation, layer_params)
    final_hidden = jax.block_until_ready(outputs[0])

    assert final_hidden.shape == (BATCH, SEQ, HIDDEN)
    assert bool(jnp.all(jnp.isfinite(final_hidden)))
    print("KERNEL_OK")
</pallas_src>

<mosaic_0001>
module attributes {stable_mosaic.version = 11 : i64} {
  func.func @_encoder_kernel(%arg0: memref<16x32xf32, #tpu.memory_space<vmem>>, %arg1: memref<2x16x16xf32, #tpu.memory_space<vmem>>, %arg2: memref<2x32x128xbf16, #tpu.memory_space<vmem>>, %arg3: memref<2x32x32xbf16, #tpu.memory_space<vmem>>, %arg4: memref<2x32x64xbf16, #tpu.memory_space<vmem>>, %arg5: memref<2x64x32xbf16, #tpu.memory_space<vmem>>, %arg6: memref<2x8x128xf32, #tpu.memory_space<vmem>>, %arg7: memref<4x128xf32, #tpu.memory_space<vmem>>) attributes {dimension_semantics = [], scalar_prefetch = 0 : i64, scratch_operands = 0 : i64, tpu.core_type = #tpu.core_type<tc>} {
    %c0 = arith.constant 0 : index
    %c0_0 = arith.constant 0 : index
    %0 = vector.load %arg0[%c0, %c0_0] : memref<16x32xf32, #tpu.memory_space<vmem>>, vector<16x32xf32>
    %c0_1 = arith.constant 0 : index
    %c0_2 = arith.constant 0 : index
    %c0_3 = arith.constant 0 : index
    %1 = vector.load %arg1[%c0_1, %c0_2, %c0_3] : memref<2x16x16xf32, #tpu.memory_space<vmem>>, vector<1x16x16xf32>
    %2 = vector.shape_cast %1 : vector<1x16x16xf32> to vector<16x16xf32>
    %c1 = arith.constant 1 : index
    %c0_4 = arith.constant 0 : index
    %c0_5 = arith.constant 0 : index
    %3 = vector.load %arg1[%c1, %c0_4, %c0_5] : memref<2x16x16xf32, #tpu.memory_space<vmem>>, vector<1x16x16xf32>
    %4 = vector.shape_cast %3 : vector<1x16x16xf32> to vector<16x16xf32>
    %c0_6 = arith.constant 0 : index
    %c0_7 = arith.constant 0 : index
    %c0_8 = arith.constant 0 : index
    %5 = vector.load %arg6[%c0_6, %c0_7, %c0_8] : memref<2x8x128xf32, #tpu.memory_space<vmem>>, vector<1x8x128xf32>
    %6 = vector.shape_cast %5 : vector<1x8x128xf32> to vector<8x128xf32>
    %7 = arith.truncf %0 : vector<16x32xf32> to vector<16x32xbf16>
    %c0_9 = arith.constant 0 : index
    %c0_10 = arith.constant 0 : index
    %c0_11 = arith.constant 0 : index
    %8 = vector.load %arg2[%c0_9, %c0_10, %c0_11] : memref<2x32x128xbf16, #tpu.memory_space<vmem>>, vector<1x32x128xbf16>
    %9 = vector.shape_cast %8 : vector<1x32x128xbf16> to vector<32x128xbf16>
    %cst = arith.constant dense<0.000000e+00> : vector<16x128xf32>
    %10 = tpu.matmul %7, %9, %cst {dimension_numbers = #tpu.dot_dimension_numbers<[1], [0], [0], [1], [0, 0, 1, 1], [], []>} : vector<16x32xbf16>, vector<32x128xbf16>, vector<16x128xf32> -> vector<16x128xf32>
    %11 = vector.extract_strided_slice %6 {offsets = [0, 0], sizes = [1, 128], strides = [1, 1]} : vector<8x128xf32> to vector<1x128xf32>
    %12 = vector.broadcast %11 : vector<1x128xf32> to vector<16x128xf32>
    %13 = arith.addf %10, %12 : vector<16x128xf32>
    %14 = vector.extract_strided_slice %13 {offsets = [0, 0], sizes = [16, 32], strides = [1, 1]} : vector<16x128xf32> to vector<16x32xf32>
    %15 = vector.extract_strided_slice %13 {offsets = [0, 32], sizes = [16, 32], strides = [1, 1]} : vector<16x128xf32> to vector<16x32xf32>
    %16 = vector.extract_strided_slice %13 {offsets = [0, 64], sizes = [16, 32], strides = [1, 1]} : vector<16x128xf32> to vector<16x32xf32>
    %17 = vector.extract_strided_slice %13 {offsets = [0, 96], sizes = [16, 1], strides = [1, 1]} : vector<16x128xf32> to vector<16x1xf32>
    %18 = arith.truncf %14 : vector<16x32xf32> to vector<16x32xbf16>
    %19 = arith.truncf %15 : vector<16x32xf32> to vector<16x32xbf16>
    %cst_12 = arith.constant dense<0.000000e+00> : vector<16x16xf32>
    %20 = tpu.matmul %18, %19, %cst_12 {dimension_numbers = #tpu.dot_dimension_numbers<[1], [1], [0], [0], [0, 0, 1, 0], [], []>} : vector<16x32xbf16>, vector<16x32xbf16>, vector<16x16xf32> -> vector<16x16xf32>
    %21 = vector.broadcast %17 : vector<16x1xf32> to vector<16x16xf32>
    %22 = arith.mulf %4, %21 : vector<16x16xf32>
    %23 = arith.addf %20, %22 : vector<16x16xf32>
    %24 = arith.addf %23, %2 : vector<16x16xf32>
    %cst_13 = arith.constant dense<0xFF800000> : vector<16xf32>
    %25 = vector.multi_reduction <maximumf>, %24, %cst_13 [1] : vector<16x16xf32> to vector<16xf32>
    %26 = vector.shape_cast %25 : vector<16xf32> to vector<16x1xf32>
    %27 = vector.broadcast %26 : vector<16x1xf32> to vector<16x16xf32>
    %28 = arith.subf %24, %27 : vector<16x16xf32>
    %29 = math.exp %28 : vector<16x16xf32>
    %cst_14 = arith.constant dense<0.000000e+00> : vector<16xf32>
    %30 = vector.multi_reduction <add>, %29, %cst_14 [1] : vector<16x16xf32> to vector<16xf32>
    %31 = vector.shape_cast %30 : vector<16xf32> to vector<16x1xf32>
    %32 = tpu.reciprocal %31 {approx = true} : vector<16x1xf32> -> vector<16x1xf32>
    %33 = vector.broadcast %32 : vector<16x1xf32> to vector<16x16xf32>
    %34 = arith.mulf %29, %33 : vector<16x16xf32>
    %35 = arith.truncf %34 : vector<16x16xf32> to vector<16x16xbf16>
    %36 = arith.truncf %16 : vector<16x32xf32> to vector<16x32xbf16>
    %cst_15 = arith.constant dense<0.000000e+00> : vector<16x32xf32>
    %37 = tpu.matmul %35, %36, %cst_15 {dimension_numbers = #tpu.dot_dimension_numbers<[1], [0], [0], [1], [0, 0, 1, 1], [], []>} : vector<16x16xbf16>, vector<16x32xbf16>, vector<16x32xf32> -> vector<16x32xf32>
    %38 = arith.truncf %37 : vector<16x32xf32> to vector<16x32xbf16>
    %c0_16 = arith.constant 0 : index
    %c0_17 = arith.constant 0 : index
    %c0_18 = arith.constant 0 : index
    %39 = vector.load %arg3[%c0_16, %c0_17, %c0_18] : memref<2x32x32xbf16, #tpu.memory_space<vmem>>, vector<1x32x32xbf16>
    %40 = vector.shape_cast %39 : vector<1x32x32xbf16> to vector<32x32xbf16>
    %cst_19 = arith.constant dense<0.000000e+00> : vector<16x32xf32>
    %41 = tpu.matmul %38, %40, %cst_19 {dimension_numbers = #tpu.dot_dimension_numbers<[1], [0], [0], [1], [0, 0, 1, 1], [], []>} : vector<16x32xbf16>, vector<32x32xbf16>, vector<16x32xf32> -> vector<16x32xf32>
    %42 = vector.extract_strided_slice %6 {offsets = [1, 0], sizes = [1, 32], strides = [1, 1]} : vector<8x128xf32> to vector<1x32xf32>
    %43 = vector.broadcast %42 : vector<1x32xf32> to vector<16x32xf32>
    %44 = arith.addf %41, %43 : vector<16x32xf32>
    %45 = arith.addf %44, %0 : vector<16x32xf32>
    %46 = vector.extract_strided_slice %6 {offsets = [2, 0], sizes = [1, 32], strides = [1, 1]} : vector<8x128xf32> to vector<1x32xf32>
    %47 = vector.extract_strided_slice %6 {offsets = [3, 0], sizes = [1, 32], strides = [1, 1]} : vector<8x128xf32> to vector<1x32xf32>
    %cst_20 = arith.constant dense<0.000000e+00> : vector<16xf32>
    %48 = vector.multi_reduction <add>, %45, %cst_20 [1] : vector<16x32xf32> to vector<16xf32>
    %49 = vector.shape_cast %48 : vector<16xf32> to vector<16x1xf32>
    %cst_21 = arith.constant 3.200000e+01 : f32
    %50 = vector.broadcast %cst_21 : f32 to vector<16x1xf32>
    %51 = arith.divf %49, %50 : vector<16x1xf32>
    %52 = vector.broadcast %51 : vector<16x1xf32> to vector<16x32xf32>
    %53 = arith.subf %45, %52 : vector<16x32xf32>
    %54 = arith.mulf %53, %53 : vector<16x32xf32>
    %cst_22 = arith.constant dense<0.000000e+00> : vector<16xf32>
    %55 = vector.multi_reduction <add>, %54, %cst_22 [1] : vector<16x32xf32> to vector<16xf32>
    %56 = vector.shape_cast %55 : vector<16xf32> to vector<16x1xf32>
    %cst_23 = arith.constant 3.200000e+01 : f32
    %57 = vector.broadcast %cst_23 : f32 to vector<16x1xf32>
    %58 = arith.divf %56, %57 : vector<16x1xf32>
    %59 = vector.broadcast %51 : vector<16x1xf32> to vector<16x32xf32>
    %60 = arith.subf %45, %59 : vector<16x32xf32>
    %cst_24 = arith.constant 9.99999996E-13 : f32
    %61 = vector.broadcast %cst_24 : f32 to vector<16x1xf32>
    %62 = arith.addf %58, %61 : vector<16x1xf32>
    %63 = math.rsqrt %62 : vector<16x1xf32>
    %64 = vector.broadcast %63 : vector<16x1xf32> to vector<16x32xf32>
    %65 = arith.mulf %60, %64 : vector<16x32xf32>
    %66 = vector.broadcast %46 : vector<1x32xf32> to vector<16x32xf32>
    %67 = arith.mulf %65, %66 : vector<16x32xf32>
    %68 = vector.broadcast %47 : vector<1x32xf32> to vector<16x32xf32>
    %69 = arith.addf %67, %68 : vector<16x32xf32>
    %70 = arith.truncf %69 : vector<16x32xf32> to vector<16x32xbf16>
    %c0_25 = arith.constant 0 : index
    %c0_26 = arith.constant 0 : index
    %c0_27 = arith.constant 0 : index
    %71 = vector.load %arg4[%c0_25, %c0_26, %c0_27] : memref<2x32x64xbf16, #tpu.memory_space<vmem>>, vector<1x32x64xbf16>
    %72 = vector.shape_cast %71 : vector<1x32x64xbf16> to vector<32x64xbf16>
    %cst_28 = arith.constant dense<0.000000e+00> : vector<16x64xf32>
    %73 = tpu.matmul %70, %72, %cst_28 {dimension_numbers = #tpu.dot_dimension_numbers<[1], [0], [0], [1], [0, 0, 1, 1], [], []>} : vector<16x32xbf16>, vector<32x64xbf16>, vector<16x64xf32> -> vector<16x64xf32>
    %74 = vector.extract_strided_slice %6 {offsets = [4, 0], sizes = [1, 64], strides = [1, 1]} : vector<8x128xf32> to vector<1x64xf32>
    %75 = vector.broadcast %74 : vector<1x64xf32> to vector<16x64xf32>
    %76 = arith.addf %73, %75 : vector<16x64xf32>
    %cst_29 = arith.constant 5.000000e-01 : f32
    %77 = vector.broadcast %cst_29 : f32 to vector<16x64xf32>
    %78 = arith.mulf %77, %76 : vector<16x64xf32>
    %cst_30 = arith.constant 4.471500e-02 : f32
    %79 = vector.broadcast %cst_30 : f32 to vector<16x64xf32>
    %80 = arith.mulf %79, %76 : vector<16x64xf32>
    %81 = arith.mulf %80, %76 : vector<16x64xf32>
    %82 = arith.mulf %81, %76 : vector<16x64xf32>
    %83 = arith.addf %76, %82 : vector<16x64xf32>
    %cst_31 = arith.constant 0.797884583 : f32
    %84 = vector.broadcast %cst_31 : f32 to vector<16x64xf32>
    %85 = arith.mulf %84, %83 : vector<16x64xf32>
    %86 = math.tanh %85 : vector<16x64xf32>
    %cst_32 = arith.constant 1.000000e+00 : f32
    %87 = vector.broadcast %cst_32 : f32 to vector<16x64xf32>
    %88 = arith.addf %87, %86 : vector<16x64xf32>
    %89 = arith.mulf %78, %88 : vector<16x64xf32>
    %90 = arith.truncf %89 : vector<16x64xf32> to vector<16x64xbf16>
    %c0_33 = arith.constant 0 : index
    %c0_34 = arith.constant 0 : index
    %c0_35 = arith.constant 0 : index
    %91 = vector.load %arg5[%c0_33, %c0_34, %c0_35] : memref<2x64x32xbf16, #tpu.memory_space<vmem>>, vector<1x64x32xbf16>
    %92 = vector.shape_cast %91 : vector<1x64x32xbf16> to vector<64x32xbf16>
    %cst_36 = arith.constant dense<0.000000e+00> : vector<16x32xf32>
    %93 = tpu.matmul %90, %92, %cst_36 {dimension_numbers = #tpu.dot_dimension_numbers<[1], [0], [0], [1], [0, 0, 1, 1], [], []>} : vector<16x64xbf16>, vector<64x32xbf16>, vector<16x32xf32> -> vector<16x32xf32>
    %94 = vector.extract_strided_slice %6 {offsets = [5, 0], sizes = [1, 32], strides = [1, 1]} : vector<8x128xf32> to vector<1x32xf32>
    %95 = vector.broadcast %94 : vector<1x32xf32> to vector<16x32xf32>
    %96 = arith.addf %93, %95 : vector<16x32xf32>
    %97 = arith.addf %96, %69 : vector<16x32xf32>
    %98 = vector.extract_strided_slice %6 {offsets = [6, 0], sizes = [1, 32], strides = [1, 1]} : vector<8x128xf32> to vector<1x32xf32>
    %99 = vector.extract_strided_slice %6 {offsets = [7, 0], sizes = [1, 32], strides = [1, 1]} : vector<8x128xf32> to vector<1x32xf32>
    %cst_37 = arith.constant dense<0.000000e+00> : vector<16xf32>
    %100 = vector.multi_reduction <add>, %97, %cst_37 [1] : vector<16x32xf32> to vector<16xf32>
    %101 = vector.shape_cast %100 : vector<16xf32> to vector<16x1xf32>
    %cst_38 = arith.constant 3.200000e+01 : f32
    %102 = vector.broadcast %cst_38 : f32 to vector<16x1xf32>
    %103 = arith.divf %101, %102 : vector<16x1xf32>
    %104 = vector.broadcast %103 : vector<16x1xf32> to vector<16x32xf32>
    %105 = arith.subf %97, %104 : vector<16x32xf32>
    %106 = arith.mulf %105, %105 : vector<16x32xf32>
    %cst_39 = arith.constant dense<0.000000e+00> : vector<16xf32>
    %107 = vector.multi_reduction <add>, %106, %cst_39 [1] : vector<16x32xf32> to vector<16xf32>
    %108 = vector.shape_cast %107 : vector<16xf32> to vector<16x1xf32>
    %cst_40 = arith.constant 3.200000e+01 : f32
    %109 = vector.broadcast %cst_40 : f32 to vector<16x1xf32>
    %110 = arith.divf %108, %109 : vector<16x1xf32>
    %111 = vector.broadcast %103 : vector<16x1xf32> to vector<16x32xf32>
    %112 = arith.subf %97, %111 : vector<16x32xf32>
    %cst_41 = arith.constant 9.99999996E-13 : f32
    %113 = vector.broadcast %cst_41 : f32 to vector<16x1xf32>
    %114 = arith.addf %110, %113 : vector<16x1xf32>
    %115 = math.rsqrt %114 : vector<16x1xf32>
    %116 = vector.broadcast %115 : vector<16x1xf32> to vector<16x32xf32>
    %117 = arith.mulf %112, %116 : vector<16x32xf32>
    %118 = vector.broadcast %98 : vector<1x32xf32> to vector<16x32xf32>
    %119 = arith.mulf %117, %118 : vector<16x32xf32>
    %120 = vector.broadcast %99 : vector<1x32xf32> to vector<16x32xf32>
    %121 = arith.addf %119, %120 : vector<16x32xf32>
    %c1_42 = arith.constant 1 : index
    %c0_43 = arith.constant 0 : index
    %c0_44 = arith.constant 0 : index
    %122 = vector.load %arg6[%c1_42, %c0_43, %c0_44] : memref<2x8x128xf32, #tpu.memory_space<vmem>>, vector<1x8x128xf32>
    %123 = vector.shape_cast %122 : vector<1x8x128xf32> to vector<8x128xf32>
    %124 = arith.truncf %121 : vector<16x32xf32> to vector<16x32xbf16>
    %c1_45 = arith.constant 1 : index
    %c0_46 = arith.constant 0 : index
    %c0_47 = arith.constant 0 : index
    %125 = vector.load %arg2[%c1_45, %c0_46, %c0_47] : memref<2x32x128xbf16, #tpu.memory_space<vmem>>, vector<1x32x128xbf16>
    %126 = vector.shape_cast %125 : vector<1x32x128xbf16> to vector<32x128xbf16>
    %cst_48 = arith.constant dense<0.000000e+00> : vector<16x128xf32>
    %127 = tpu.matmul %124, %126, %cst_48 {dimension_numbers = #tpu.dot_dimension_numbers<[1], [0], [0], [1], [0, 0, 1, 1], [], []>} : vector<16x32xbf16>, vector<32x128xbf16>, vector<16x128xf32> -> vector<16x128xf32>
    %128 = vector.extract_strided_slice %123 {offsets = [0, 0], sizes = [1, 128], strides = [1, 1]} : vector<8x128xf32> to vector<1x128xf32>
    %129 = vector.broadcast %128 : vector<1x128xf32> to vector<16x128xf32>
    %130 = arith.addf %127, %129 : vector<16x128xf32>
    %131 = vector.extract_strided_slice %130 {offsets = [0, 0], sizes = [16, 32], strides = [1, 1]} : vector<16x128xf32> to vector<16x32xf32>
    %132 = vector.extract_strided_slice %130 {offsets = [0, 32], sizes = [16, 32], strides = [1, 1]} : vector<16x128xf32> to vector<16x32xf32>
    %133 = vector.extract_strided_slice %130 {offsets = [0, 64], sizes = [16, 32], strides = [1, 1]} : vector<16x128xf32> to vector<16x32xf32>
    %134 = vector.extract_strided_slice %130 {offsets = [0, 96], sizes = [16, 1], strides = [1, 1]} : vector<16x128xf32> to vector<16x1xf32>
    %135 = arith.truncf %131 : vector<16x32xf32> to vector<16x32xbf16>
    %136 = arith.truncf %132 : vector<16x32xf32> to vector<16x32xbf16>
    %cst_49 = arith.constant dense<0.000000e+00> : vector<16x16xf32>
    %137 = tpu.matmul %135, %136, %cst_49 {dimension_numbers = #tpu.dot_dimension_numbers<[1], [1], [0], [0], [0, 0, 1, 0], [], []>} : vector<16x32xbf16>, vector<16x32xbf16>, vector<16x16xf32> -> vector<16x16xf32>
    %138 = vector.broadcast %134 : vector<16x1xf32> to vector<16x16xf32>
    %139 = arith.mulf %4, %138 : vector<16x16xf32>
    %140 = arith.addf %137, %139 : vector<16x16xf32>
    %141 = arith.addf %140, %2 : vector<16x16xf32>
    %cst_50 = arith.constant dense<0xFF800000> : vector<16xf32>
    %142 = vector.multi_reduction <maximumf>, %141, %cst_50 [1] : vector<16x16xf32> to vector<16xf32>
    %143 = vector.shape_cast %142 : vector<16xf32> to vector<16x1xf32>
    %144 = vector.broadcast %143 : vector<16x1xf32> to vector<16x16xf32>
    %145 = arith.subf %141, %144 : vector<16x16xf32>
    %146 = math.exp %145 : vector<16x16xf32>
    %cst_51 = arith.constant dense<0.000000e+00> : vector<16xf32>
    %147 = vector.multi_reduction <add>, %146, %cst_51 [1] : vector<16x16xf32> to vector<16xf32>
    %148 = vector.shape_cast %147 : vector<16xf32> to vector<16x1xf32>
    %149 = tpu.reciprocal %148 {approx = true} : vector<16x1xf32> -> vector<16x1xf32>
    %150 = vector.broadcast %149 : vector<16x1xf32> to vector<16x16xf32>
    %151 = arith.mulf %146, %150 : vector<16x16xf32>
    %152 = arith.truncf %151 : vector<16x16xf32> to vector<16x16xbf16>
    %153 = arith.truncf %133 : vector<16x32xf32> to vector<16x32xbf16>
    %cst_52 = arith.constant dense<0.000000e+00> : vector<16x32xf32>
    %154 = tpu.matmul %152, %153, %cst_52 {dimension_numbers = #tpu.dot_dimension_numbers<[1], [0], [0], [1], [0, 0, 1, 1], [], []>} : vector<16x16xbf16>, vector<16x32xbf16>, vector<16x32xf32> -> vector<16x32xf32>
    %155 = arith.truncf %154 : vector<16x32xf32> to vector<16x32xbf16>
    %c1_53 = arith.constant 1 : index
    %c0_54 = arith.constant 0 : index
    %c0_55 = arith.constant 0 : index
    %156 = vector.load %arg3[%c1_53, %c0_54, %c0_55] : memref<2x32x32xbf16, #tpu.memory_space<vmem>>, vector<1x32x32xbf16>
    %157 = vector.shape_cast %156 : vector<1x32x32xbf16> to vector<32x32xbf16>
    %cst_56 = arith.constant dense<0.000000e+00> : vector<16x32xf32>
    %158 = tpu.matmul %155, %157, %cst_56 {dimension_numbers = #tpu.dot_dimension_numbers<[1], [0], [0], [1], [0, 0, 1, 1], [], []>} : vector<16x32xbf16>, vector<32x32xbf16>, vector<16x32xf32> -> vector<16x32xf32>
    %159 = vector.extract_strided_slice %123 {offsets = [1, 0], sizes = [1, 32], strides = [1, 1]} : vector<8x128xf32> to vector<1x32xf32>
    %160 = vector.broadcast %159 : vector<1x32xf32> to vector<16x32xf32>
    %161 = arith.addf %158, %160 : vector<16x32xf32>
    %162 = arith.addf %161, %121 : vector<16x32xf32>
    %163 = vector.extract_strided_slice %123 {offsets = [2, 0], sizes = [1, 32], strides = [1, 1]} : vector<8x128xf32> to vector<1x32xf32>
    %164 = vector.extract_strided_slice %123 {offsets = [3, 0], sizes = [1, 32], strides = [1, 1]} : vector<8x128xf32> to vector<1x32xf32>
    %cst_57 = arith.constant dense<0.000000e+00> : vector<16xf32>
    %165 = vector.multi_reduction <add>, %162, %cst_57 [1] : vector<16x32xf32> to vector<16xf32>
    %166 = vector.shape_cast %165 : vector<16xf32> to vector<16x1xf32>
    %cst_58 = arith.constant 3.200000e+01 : f32
    %167 = vector.broadcast %cst_58 : f32 to vector<16x1xf32>
    %168 = arith.divf %166, %167 : vector<16x1xf32>
    %169 = vector.broadcast %168 : vector<16x1xf32> to vector<16x32xf32>
    %170 = arith.subf %162, %169 : vector<16x32xf32>
    %171 = arith.mulf %170, %170 : vector<16x32xf32>
    %cst_59 = arith.constant dense<0.000000e+00> : vector<16xf32>
    %172 = vector.multi_reduction <add>, %171, %cst_59 [1] : vector<16x32xf32> to vector<16xf32>
    %173 = vector.shape_cast %172 : vector<16xf32> to vector<16x1xf32>
    %cst_60 = arith.constant 3.200000e+01 : f32
    %174 = vector.broadcast %cst_60 : f32 to vector<16x1xf32>
    %175 = arith.divf %173, %174 : vector<16x1xf32>
    %176 = vector.broadcast %168 : vector<16x1xf32> to vector<16x32xf32>
    %177 = arith.subf %162, %176 : vector<16x32xf32>
    %cst_61 = arith.constant 9.99999996E-13 : f32
    %178 = vector.broadcast %cst_61 : f32 to vector<16x1xf32>
    %179 = arith.addf %175, %178 : vector<16x1xf32>
    %180 = math.rsqrt %179 : vector<16x1xf32>
    %181 = vector.broadcast %180 : vector<16x1xf32> to vector<16x32xf32>
    %182 = arith.mulf %177, %181 : vector<16x32xf32>
    %183 = vector.broadcast %163 : vector<1x32xf32> to vector<16x32xf32>
    %184 = arith.mulf %182, %183 : vector<16x32xf32>
    %185 = vector.broadcast %164 : vector<1x32xf32> to vector<16x32xf32>
    %186 = arith.addf %184, %185 : vector<16x32xf32>
    %187 = arith.truncf %186 : vector<16x32xf32> to vector<16x32xbf16>
    %c1_62 = arith.constant 1 : index
    %c0_63 = arith.constant 0 : index
    %c0_64 = arith.constant 0 : index
    %188 = vector.load %arg4[%c1_62, %c0_63, %c0_64] : memref<2x32x64xbf16, #tpu.memory_space<vmem>>, vector<1x32x64xbf16>
    %189 = vector.shape_cast %188 : vector<1x32x64xbf16> to vector<32x64xbf16>
    %cst_65 = arith.constant dense<0.000000e+00> : vector<16x64xf32>
    %190 = tpu.matmul %187, %189, %cst_65 {dimension_numbers = #tpu.dot_dimension_numbers<[1], [0], [0], [1], [0, 0, 1, 1], [], []>} : vector<16x32xbf16>, vector<32x64xbf16>, vector<16x64xf32> -> vector<16x64xf32>
    %191 = vector.extract_strided_slice %123 {offsets = [4, 0], sizes = [1, 64], strides = [1, 1]} : vector<8x128xf32> to vector<1x64xf32>
    %192 = vector.broadcast %191 : vector<1x64xf32> to vector<16x64xf32>
    %193 = arith.addf %190, %192 : vector<16x64xf32>
    %cst_66 = arith.constant 5.000000e-01 : f32
    %194 = vector.broadcast %cst_66 : f32 to vector<16x64xf32>
    %195 = arith.mulf %194, %193 : vector<16x64xf32>
    %cst_67 = arith.constant 4.471500e-02 : f32
    %196 = vector.broadcast %cst_67 : f32 to vector<16x64xf32>
    %197 = arith.mulf %196, %193 : vector<16x64xf32>
    %198 = arith.mulf %197, %193 : vector<16x64xf32>
    %199 = arith.mulf %198, %193 : vector<16x64xf32>
    %200 = arith.addf %193, %199 : vector<16x64xf32>
    %cst_68 = arith.constant 0.797884583 : f32
    %201 = vector.broadcast %cst_68 : f32 to vector<16x64xf32>
    %202 = arith.mulf %201, %200 : vector<16x64xf32>
    %203 = math.tanh %202 : vector<16x64xf32>
    %cst_69 = arith.constant 1.000000e+00 : f32
    %204 = vector.broadcast %cst_69 : f32 to vector<16x64xf32>
    %205 = arith.addf %204, %203 : vector<16x64xf32>
    %206 = arith.mulf %195, %205 : vector<16x64xf32>
    %207 = arith.truncf %206 : vector<16x64xf32> to vector<16x64xbf16>
    %c1_70 = arith.constant 1 : index
    %c0_71 = arith.constant 0 : index
    %c0_72 = arith.constant 0 : index
    %208 = vector.load %arg5[%c1_70, %c0_71, %c0_72] : memref<2x64x32xbf16, #tpu.memory_space<vmem>>, vector<1x64x32xbf16>
    %209 = vector.shape_cast %208 : vector<1x64x32xbf16> to vector<64x32xbf16>
    %cst_73 = arith.constant dense<0.000000e+00> : vector<16x32xf32>
    %210 = tpu.matmul %207, %209, %cst_73 {dimension_numbers = #tpu.dot_dimension_numbers<[1], [0], [0], [1], [0, 0, 1, 1], [], []>} : vector<16x64xbf16>, vector<64x32xbf16>, vector<16x32xf32> -> vector<16x32xf32>
    %211 = vector.extract_strided_slice %123 {offsets = [5, 0], sizes = [1, 32], strides = [1, 1]} : vector<8x128xf32> to vector<1x32xf32>
    %212 = vector.broadcast %211 : vector<1x32xf32> to vector<16x32xf32>
    %213 = arith.addf %210, %212 : vector<16x32xf32>
    %214 = arith.addf %213, %186 : vector<16x32xf32>
    %215 = vector.extract_strided_slice %123 {offsets = [6, 0], sizes = [1, 32], strides = [1, 1]} : vector<8x128xf32> to vector<1x32xf32>
    %216 = vector.extract_strided_slice %123 {offsets = [7, 0], sizes = [1, 32], strides = [1, 1]} : vector<8x128xf32> to vector<1x32xf32>
    %cst_74 = arith.constant dense<0.000000e+00> : vector<16xf32>
    %217 = vector.multi_reduction <add>, %214, %cst_74 [1] : vector<16x32xf32> to vector<16xf32>
    %218 = vector.shape_cast %217 : vector<16xf32> to vector<16x1xf32>
    %cst_75 = arith.constant 3.200000e+01 : f32
    %219 = vector.broadcast %cst_75 : f32 to vector<16x1xf32>
    %220 = arith.divf %218, %219 : vector<16x1xf32>
    %221 = vector.broadcast %220 : vector<16x1xf32> to vector<16x32xf32>
    %222 = arith.subf %214, %221 : vector<16x32xf32>
    %223 = arith.mulf %222, %222 : vector<16x32xf32>
    %cst_76 = arith.constant dense<0.000000e+00> : vector<16xf32>
    %224 = vector.multi_reduction <add>, %223, %cst_76 [1] : vector<16x32xf32> to vector<16xf32>
    %225 = vector.shape_cast %224 : vector<16xf32> to vector<16x1xf32>
    %cst_77 = arith.constant 3.200000e+01 : f32
    %226 = vector.broadcast %cst_77 : f32 to vector<16x1xf32>
    %227 = arith.divf %225, %226 : vector<16x1xf32>
    %228 = vector.broadcast %220 : vector<16x1xf32> to vector<16x32xf32>
    %229 = arith.subf %214, %228 : vector<16x32xf32>
    %cst_78 = arith.constant 9.99999996E-13 : f32
    %230 = vector.broadcast %cst_78 : f32 to vector<16x1xf32>
    %231 = arith.addf %227, %230 : vector<16x1xf32>
    %232 = math.rsqrt %231 : vector<16x1xf32>
    %233 = vector.broadcast %232 : vector<16x1xf32> to vector<16x32xf32>
    %234 = arith.mulf %229, %233 : vector<16x32xf32>
    %235 = vector.broadcast %215 : vector<1x32xf32> to vector<16x32xf32>
    %236 = arith.mulf %234, %235 : vector<16x32xf32>
    %237 = vector.broadcast %216 : vector<1x32xf32> to vector<16x32xf32>
    %238 = arith.addf %236, %237 : vector<16x32xf32>
    %239 = tpu.iota {dimensions = array<i32: 0>} : vector<32x128xi32>
    %240 = tpu.iota {dimensions = array<i32: 1>} : vector<32x128xi32>
    %cst_79 = arith.constant 0.000000e+00 : f32
    %241 = vector.broadcast %cst_79 : f32 to vector<4x128xf32>
    %c0_i32 = arith.constant 0 : i32
    %242 = vector.broadcast %c0_i32 : i32 to vector<32x128xi32>
    %243 = arith.addi %242, %239 : vector<32x128xi32>
    %244 = arith.cmpi eq, %240, %243 : vector<32x128xi32>
    %245 = arith.extui %244 : vector<32x128xi1> to vector<32x128xi32>
    %246 = arith.sitofp %245 : vector<32x128xi32> to vector<32x128xf32>
    %247 = vector.extract_strided_slice %238 {offsets = [0, 0], sizes = [4, 32], strides = [1, 1]} : vector<16x32xf32> to vector<4x32xf32>
    %cst_80 = arith.constant dense<0.000000e+00> : vector<4x128xf32>
    %248 = tpu.matmul %247, %246, %cst_80 {dimension_numbers = #tpu.dot_dimension_numbers<[1], [0], [0], [1], [0, 0, 1, 1], [], []>} : vector<4x32xf32>, vector<32x128xf32>, vector<4x128xf32> -> vector<4x128xf32>
    %249 = arith.addf %241, %248 : vector<4x128xf32>
    %c32_i32 = arith.constant 32 : i32
    %250 = vector.broadcast %c32_i32 : i32 to vector<32x128xi32>
    %251 = arith.addi %250, %239 : vector<32x128xi32>
    %252 = arith.cmpi eq, %240, %251 : vector<32x128xi32>
    %253 = arith.extui %252 : vector<32x128xi1> to vector<32x128xi32>
    %254 = arith.sitofp %253 : vector<32x128xi32> to vector<32x128xf32>
    %255 = vector.extract_strided_slice %238 {offsets = [4, 0], sizes = [4, 32], strides = [1, 1]} : vector<16x32xf32> to vector<4x32xf32>
    %cst_81 = arith.constant dense<0.000000e+00> : vector<4x128xf32>
    %256 = tpu.matmul %255, %254, %cst_81 {dimension_numbers = #tpu.dot_dimension_numbers<[1], [0], [0], [1], [0, 0, 1, 1], [], []>} : vector<4x32xf32>, vector<32x128xf32>, vector<4x128xf32> -> vector<4x128xf32>
    %257 = arith.addf %249, %256 : vector<4x128xf32>
    %c64_i32 = arith.constant 64 : i32
    %258 = vector.broadcast %c64_i32 : i32 to vector<32x128xi32>
    %259 = arith.addi %258, %239 : vector<32x128xi32>
    %260 = arith.cmpi eq, %240, %259 : vector<32x128xi32>
    %261 = arith.extui %260 : vector<32x128xi1> to vector<32x128xi32>
    %262 = arith.sitofp %261 : vector<32x128xi32> to vector<32x128xf32>
    %263 = vector.extract_strided_slice %238 {offsets = [8, 0], sizes = [4, 32], strides = [1, 1]} : vector<16x32xf32> to vector<4x32xf32>
    %cst_82 = arith.constant dense<0.000000e+00> : vector<4x128xf32>
    %264 = tpu.matmul %263, %262, %cst_82 {dimension_numbers = #tpu.dot_dimension_numbers<[1], [0], [0], [1], [0, 0, 1, 1], [], []>} : vector<4x32xf32>, vector<32x128xf32>, vector<4x128xf32> -> vector<4x128xf32>
    %265 = arith.addf %257, %264 : vector<4x128xf32>
    %c96_i32 = arith.constant 96 : i32
    %266 = vector.broadcast %c96_i32 : i32 to vector<32x128xi32>
    %267 = arith.addi %266, %239 : vector<32x128xi32>
    %268 = arith.cmpi eq, %240, %267 : vector<32x128xi32>
    %269 = arith.extui %268 : vector<32x128xi1> to vector<32x128xi32>
    %270 = arith.sitofp %269 : vector<32x128xi32> to vector<32x128xf32>
    %271 = vector.extract_strided_slice %238 {offsets = [12, 0], sizes = [4, 32], strides = [1, 1]} : vector<16x32xf32> to vector<4x32xf32>
    %cst_83 = arith.constant dense<0.000000e+00> : vector<4x128xf32>
    %272 = tpu.matmul %271, %270, %cst_83 {dimension_numbers = #tpu.dot_dimension_numbers<[1], [0], [0], [1], [0, 0, 1, 1], [], []>} : vector<4x32xf32>, vector<32x128xf32>, vector<4x128xf32> -> vector<4x128xf32>
    %273 = arith.addf %265, %272 : vector<4x128xf32>
    %c0_84 = arith.constant 0 : index
    %c0_85 = arith.constant 0 : index
    %274 = vector.load %arg7[%c0_84, %c0_85] : memref<4x128xf32, #tpu.memory_space<vmem>>, vector<4x128xf32>
    tpu.vector_store %arg7[%c0_84, %c0_85], %273 {strides = array<i32>} : memref<4x128xf32, #tpu.memory_space<vmem>>, vector<4x128xf32>,
    return
  }
}

</mosaic_0001>

<bundles_post_ra>
// kernel: bert_encoder_distance.1
= control target key start
LH: loop header
LB: loop body
LE: loop exit
PB: predicated region body
PF: predicated region fallthrough
CT: control target
= control target key end

     0   :  { %v1784_v0 = vmov 0.0   ;;  %vm1785_vm0 = vmmov 0   ;;  %vm56_vm1 = vcmask 261120   ;;  %v1786_v6 = vmov 96   ;;  %s1787_s10 = smov 96   ;;  %s2215_s2 = inlined_call_operand.vmem [shape: bf16[2,32,128], index: 2, kind: input, shape index: {}]   ;;  %s2216_s0 = inlined_call_operand.vmem [shape: f32[16,32], index: 0, kind: input, shape index: {}]   ;;  %s2217_s6 = inlined_call_operand.vmem [shape: f32[2,8,128], index: 6, kind: input, shape index: {}]   ;;  %s2218_s1 = inlined_call_operand.vmem [shape: f32[2,16,16], index: 1, kind: input, shape index: {}]   ;;  %s2219_s3 = inlined_call_operand.vmem [shape: bf16[2,32,32], index: 3, kind: input, shape index: {}]   ;;  %s2220_s4 = inlined_call_operand.vmem [shape: bf16[2,32,64], index: 4, kind: input, shape index: {}]   ;;  %s2221_s5 = inlined_call_operand.vmem [shape: bf16[2,64,32], index: 5, kind: input, shape index: {}]   ;;  %s2222_s7 = inlined_call_operand.vmem [shape: f32[4,128], index: 7, kind: output, shape index: {}]  }
   0x1   :  { %1576 = vmatprep.subr.bf16.mxu0 %v1784_v0  ;;  %v1724_v1 = vld [vmem:[%s2215_s2 + $0x8] sm:$0xff]   ;;  %1580 = vmatprep.mubr.msk.bf16.mxu0 %vm1785_vm0, %v1784_v0  ;;  %v1725_v2 = vld [vmem:[%s2215_s2] sm:$0xff]   ;;  %v40_v7 = vlaneseq  ;;  %v1880_v21 = vld [vmem:[%s2218_s1 + $0x10] sm:$0xff]  ;;  %vm166_vm2 = vcmask 130048   ;;  %vm463_vm3 = vcmask 523264  }
   0x2   :  { %1584 = vmatprep.subr.bf16.mxu1 %v1784_v0  ;;  %1586 = vmatprep.mubr.msk.bf16.mxu1 %vm1785_vm0, %v1784_v0  ;;  %v1845_v3 = vld [vmem:[%s2216_s0] sm:$0xff]  ;;  %v1850_v4 = vld [vmem:[%s2216_s0 + $0x8] sm:$0xff]  ;;  %v1886_v24 = vld [vmem:[%s2218_s1 + $0x18] sm:$0xff] }
   0x3   :  { %1577 = vmatpush3.bf16.msra.mxu0 %v1724_v1  ;;  %v35_v5 = vpack.c.bf16 %v1850_v4, %v1845_v3  ;;  %1723 = vset.pattern.permute.xlu1 %v1786_v6  ;;  %v1860_v8 = vshrl.u32 %v40_v7, 7  ;;  %v1866_v10 = vld [vmem:[%s2217_s6] sm:$0xff]  ;;  %v1898_v33 = vld [vmem:[%s2218_s1 + $0x8] sm:$0xff] }
   0x4   :  { %1578 = vmatprep.subr.bf16.mxu0 %v1784_v0  ;;  %1722 = vset.pattern.permute.xlu0 %v1786_v6  ;;  %v1891_v27 = vld [vmem:[%s2218_s1] sm:$0xff]  ;;  %s1788_s1 = smov 64   ;;  %v1726_v57 = vld [vmem:[%s2219_s3 + $0x8] sm:$0xff]  }
   0x5   :  { %v42_v9 = vsub.s32 0, %v1860_v8  ;;  %v1727_v58 = vld [vmem:[%s2219_s3] sm:$0xff]   ;;  %v244_v1 = vsub.s32 1, %v1860_v8 }
   0x7   :  { %1579 = vmatpush3.bf16.msra.mxu0 %v1725_v2  ;;  %v43_v12 = vrot.slane %v1866_v10, %v42_v9  ;;  %v245_v2 = vrot.slane %v1866_v10, %v244_v1 }
   0x8   :  { %1590 = vmatprep.subr.bf16.mxu0 %v1784_v0 }
   0xa   :  { %1581 = vmatmul.mubr.msk.bf16.vlgmr.msra.gmra.mxu0 %vm56_vm1, %v35_v5 }
   0xb   :  { %1592 = vmatprep.mubr.msk.bf16.mxu0 %vm1785_vm0, %v1784_v0 }
  0xca   :  { %v94_v11 = vpop.f32.mrf.mxu0 }
  0xcb   :  { %v95_v15 = vadd.f32 %v94_v11, %v43_v12 }
  0xcc   :  { %v1582_v13 = vpop.f32.mrf.mxu0 }
  0xce   :  { %v97_v14 = vpop.f32.mrf.mxu0 }
  0xcf   :  { %v98_v16 = vadd.f32 %v97_v14, %v43_v12 }
  0xd0   :  { %v1583_v17 = vpop.f32.mrf.mxu0 }
  0xd1   :  { %v101_v18 = vpack.c.bf16 %v98_v16, %v95_v15  ;;  %109 = vperm.xlu1 %1723, %v98_v16  }
  0xd3   :  { %115 = vrot.lane.b32.xlu0 %v101_v18, %s1787_s10 }
  0xd7   :  { %104 = vperm.xlu0 %1722, %v95_v15  }
 0x145   :  { %v116_v19 = vpop.permute.xlu0 %115 }
 0x146   :  { %v121_v20 = vsel %vm56_vm1, %v116_v19, 0 }
 0x147   :  { %1585 = vmatpush3.bf16.xpose.msra.mxu1 %v121_v20 }
 0x148   :  { %1596 = vmatprep.subr.bf16.mxu1 %v1784_v0 }
 0x14c   :  { %v110_v25 = vpop.permute.xlu1 %109 }
 0x14d   :  { %v113_v30 = vmul.f32 %v1886_v24, %v110_v25 }
 0x14e   :  { %1587 = vmatmul.mubr.msk.bf16.vlgmr.msra.gmra.mxu1 %vm56_vm1, %v101_v18 }
 0x14f   :  { %1600 = vmatprep.mubr.msk.bf16.mxu1 %vm1785_vm0, %v1784_v0  ;;  %1597 = vmatpush3.bf16.msra.mxu1 %v1726_v57 }
 0x150   :  { %1598 = vmatprep.subr.bf16.mxu1 %v1784_v0 }
 0x152   :  { %v105_v22 = vpop.permute.xlu0 %104 }
 0x153   :  { %v112_v23 = vmul.f32 %v1880_v21, %v105_v22  ;;  %1599 = vmatpush3.bf16.msra.mxu1 %v1727_v58 }
 0x154   :  { %1612 = vmatprep.subr.bf16.mxu1 %v1784_v0 }
 0x20e   :  { %v157_v26 = vpop.f32.mrf.mxu1 }
 0x20f   :  { %v158_v28 = vadd.f32 %v157_v26, %v112_v23 }
 0x210   :  { %v1588_v29 = vpop.f32.mrf.mxu1 }
 0x211   :  { %v164_v31 = vadd.f32 %v158_v28, %v1891_v27 }
 0x212   :  { %v160_v32 = vpop.f32.mrf.mxu1 }
 0x213   :  { %v161_v34 = vadd.f32 %v160_v32, %v113_v30  ;;  %v167_v35 = vsel %vm166_vm2, %v164_v31, -inf }
 0x214   :  { %v1589_v36 = vpop.f32.mrf.mxu1  ;;  %168 = vmax.xlane.f32.xlu1 %v167_v35 }
 0x215   :  { %v165_v37 = vadd.f32 %v161_v34, %v1898_v33 }
 0x217   :  { %v170_v38 = vsel %vm166_vm2, %v165_v37, -inf }
 0x218   :  { %171 = vmax.xlane.f32.xlu0 %v170_v38 }
 0x29d   :  { %v169_v39 = vpop.xlane.xlu1 %168 }
 0x29e   :  { %v173_v40 = vsub.f32 %v164_v31, %v169_v39  ;;  %v1729_v31 = vld [vmem:[%s2220_s4] sm:$0xff]   ;;  %v333_v39 = vsub.s32 2, %v1860_v8 }
 0x2a0   :  { %v175_v41 = vmul.f32 1.442695, %v173_v40 }
 0x2a1   :  { %v172_v42 = vpop.xlane.xlu0 %171 }
 0x2a2   :  { %1744 = vpow2.f32 %v175_v41  ;;  %v174_v43 = vsub.f32 %v165_v37, %v172_v42  ;;  %v334_v42 = vrot.slane %v1866_v10, %v333_v39 }
 0x2a4   :  { %v177_v44 = vmul.f32 1.442695, %v174_v43  ;;  %v339_v43 = vsub.s32 3, %v1860_v8 }
 0x2a6   :  { %1746 = vpow2.f32 %v177_v44 }
 0x2af   :  { %v1745_v45 = vpop.eup %1744 }
 0x2b0   :  { %v179_v46 = vsel %vm166_vm2, %v1745_v45, 0.0 }
 0x2b1   :  { %180 = vadd.xlane.f32.xlu1 %v179_v46 }
 0x2b3   :  { %v1747_v47 = vpop.eup %1746 }
 0x2b4   :  { %v182_v48 = vsel %vm166_vm2, %v1747_v47, 0.0 }
 0x2b5   :  { %183 = vadd.xlane.f32.xlu0 %v182_v48 }
 0x2c2   :  { %190 = vrot.lane.b32.xlu1 %v101_v18, %s1788_s1 }
 0x33a   :  { %v181_v49 = vpop.xlane.xlu1 %180 }
 0x33b   :  { %1748 = vrcp.f32 %v181_v49 }
 0x33e   :  { %v191_v50 = vpop.permute.xlu1 %190  ;;  %v184_v51 = vpop.xlane.xlu0 %183 }
 0x33f   :  { %1750 = vrcp.f32 %v184_v51  ;;  %1591 = vmatpush3.bf16.msra.mxu0 %v191_v50 }
 0x340   :  { %1604 = vmatprep.subr.bf16.mxu0 %v1784_v0 }
 0x348   :  { %v1749_v52 = vpop.eup %1748 }
 0x349   :  { %v187_v54 = vmul.f32 %v1749_v52, %v1745_v45  ;;  %v1730_v52 = vld [vmem:[%s2221_s5 + $0x18] sm:$0xff]  }
 0x34c   :  { %v1751_v53 = vpop.eup %1750 }
 0x34d   :  { %v188_v55 = vmul.f32 %v1751_v53, %v1747_v47  ;;  %v340_v47 = vrot.slane %v1866_v10, %v339_v43  ;;  %v1731_v53 = vld [vmem:[%s2221_s5 + $0x10] sm:$0xff]  }
 0x34f   :  { %v189_v56 = vpack.c.bf16 %v188_v55, %v187_v54  ;;  %v1732_v54 = vld [vmem:[%s2221_s5 + $0x8] sm:$0xff]   ;;  %v1733_v55 = vld [vmem:[%s2221_s5] sm:$0xff]  }
 0x351   :  { %1593 = vmatmul.mubr.msk.bf16.vlgmr.msra.gmra.mxu0 %vm166_vm2, %v189_v56  ;;  %v350_v56 = vsub.s32 4, %v1860_v8 }
 0x352   :  { %1608 = vmatprep.mubr.msk.bf16.mxu0 %vm1785_vm0, %v1784_v0 }
 0x353   :  { %v351_v57 = vrot.slane %v1866_v10, %v350_v56 }
 0x411   :  { %v230_v59 = vpop.f32.mrf.mxu0 }
 0x413   :  { %v1594_v60 = vpop.f32.mrf.mxu0 }
 0x415   :  { %v233_v61 = vpop.f32.mrf.mxu0 }
 0x416   :  { %v237_v62 = vpack.c.bf16 %v233_v61, %v230_v59 }
 0x417   :  { %v1595_v63 = vpop.f32.mrf.mxu0 }
 0x418   :  { %1601 = vmatmul.mubr.msk.bf16.vlgmr.msra.gmra.mxu1 %vm56_vm1, %v237_v62 }
 0x419   :  { %1620 = vmatprep.mubr.msk.bf16.mxu1 %vm1785_vm0, %v1784_v0  ;;  %1613 = vmatpush3.bf16.msra.mxu1 %v1730_v52 }
 0x41a   :  { %1614 = vmatprep.subr.bf16.mxu1 %v1784_v0 }
 0x41d   :  { %1615 = vmatpush3.bf16.msra.mxu1 %v1731_v53 }
 0x41e   :  { %1616 = vmatprep.subr.bf16.mxu1 %v1784_v0 }
 0x421   :  { %1617 = vmatpush3.bf16.msra.mxu1 %v1732_v54  ;;  %v1735_v54 = vld [vmem:[%s2215_s2 + $0x10] sm:$0xff]  }
 0x422   :  { %1618 = vmatprep.subr.bf16.mxu1 %v1784_v0 }
 0x425   :  { %1619 = vmatpush3.bf16.msra.mxu1 %v1733_v55 }
 0x426   :  { %1638 = vmatprep.subr.bf16.mxu1 %v1784_v0 }
 0x4d8   :  { %v295_v5 = vpop.f32.mrf.mxu1 }
 0x4d9   :  { %v296_v6 = vadd.f32 %v295_v5, %v245_v2 }
 0x4da   :  { %v1602_v11 = vpop.f32.mrf.mxu1 }
 0x4db   :  { %v302_v12 = vadd.f32 %v296_v6, %v1845_v3 }
 0x4dc   :  { %v298_v13 = vpop.f32.mrf.mxu1 }
 0x4dd   :  { %v299_v14 = vadd.f32 %v298_v13, %v245_v2  ;;  %v304_v15 = vsel %vm56_vm1, %v302_v12, 0.0 }
 0x4de   :  { %305 = vadd.xlane.f32.xlu0 %v304_v15  ;;  %v1603_v16 = vpop.f32.mrf.mxu1 }
 0x4df   :  { %v303_v17 = vadd.f32 %v299_v14, %v1850_v4  ;;  %v1728_v4 = vld [vmem:[%s2220_s4 + $0x8] sm:$0xff]  }
 0x4e0   :  { %1605 = vmatpush3.bf16.msra.mxu0 %v1728_v4 }
 0x4e1   :  { %v307_v18 = vsel %vm56_vm1, %v303_v17, 0.0  ;;  %1606 = vmatprep.subr.bf16.mxu0 %v1784_v0 }
 0x4e2   :  { %308 = vadd.xlane.f32.xlu0 %v307_v18 }
 0x4e4   :  { %1607 = vmatpush3.bf16.msra.mxu0 %v1729_v31 }
 0x4e5   :  { %1624 = vmatprep.subr.bf16.mxu0 %v1784_v0 }
 0x567   :  { %v306_v19 = vpop.xlane.xlu0 %305 }
 0x568   :  { %v311_v20 = vmul.f32 0.03125, %v306_v19 }
 0x56a   :  { %v313_v22 = vsub.f32 %v302_v12, %v311_v20 }
 0x56b   :  { %v309_v23 = vpop.xlane.xlu0 %308 }
 0x56c   :  { %v312_v25 = vmul.f32 0.03125, %v309_v23  ;;  %v315_v26 = vmul.f32 %v313_v22, %v313_v22 }
 0x56e   :  { %v314_v28 = vsub.f32 %v303_v17, %v312_v25  ;;  %v317_v3 = vsel %vm56_vm1, %v315_v26, 0.0 }
 0x56f   :  { %318 = vadd.xlane.f32.xlu0 %v317_v3 }
 0x570   :  { %v316_v29 = vmul.f32 %v314_v28, %v314_v28 }
 0x572   :  { %v320_v30 = vsel %vm56_vm1, %v316_v29, 0.0  ;;  %v437_v29 = vsub.s32 5, %v1860_v8 }
 0x573   :  { %321 = vadd.xlane.f32.xlu0 %v320_v30 }
 0x574   :  { %v438_v30 = vrot.slane %v1866_v10, %v437_v29 }
 0x5f8   :  { %v319_v32 = vpop.xlane.xlu0 %318 }
 0x5f9   :  { %v323_v34 = vmul.f32 0.03125, %v319_v32 }
 0x5fb   :  { %v325_v35 = vadd.f32 1e-12, %v323_v34 }
 0x5fc   :  { %v322_v36 = vpop.xlane.xlu0 %321 }
 0x5fd   :  { %1752 = vrsqrt.f32 %v325_v35  ;;  %v324_v37 = vmul.f32 0.03125, %v322_v36 }
 0x5ff   :  { %v326_v38 = vadd.f32 1e-12, %v324_v37 }
 0x601   :  { %1754 = vrsqrt.f32 %v326_v38 }
 0x60a   :  { %v1753_v40 = vpop.eup %1752 }
 0x60b   :  { %v329_v41 = vmul.f32 %v1753_v40, %v313_v22 }
 0x60d   :  { %v335_v46 = vmul.f32 %v334_v42, %v329_v41 }
 0x60e   :  { %v1755_v44 = vpop.eup %1754 }
 0x60f   :  { %v330_v45 = vmul.f32 %v1755_v44, %v314_v28  ;;  %v341_v49 = vadd.f32 %v340_v47, %v335_v46 }
 0x611   :  { %v336_v48 = vmul.f32 %v334_v42, %v330_v45 }
 0x613   :  { %v342_v50 = vadd.f32 %v340_v47, %v336_v48 }
 0x615   :  { %v343_v51 = vpack.c.bf16 %v342_v50, %v341_v49 }
 0x617   :  { %1609 = vmatmul.mubr.msk.bf16.vlgmr.msra.gmra.mxu0 %vm56_vm1, %v343_v51 }
 0x618   :  { %1628 = vmatprep.mubr.msk.bf16.mxu0 %vm1785_vm0, %v1784_v0 }
 0x6d7   :  { %v401_v58 = vpop.f32.mrf.mxu0 }
 0x6d8   :  { %v402_v59 = vadd.f32 %v401_v58, %v351_v57 }
 0x6d9   :  { %v1610_v60 = vpop.f32.mrf.mxu0 }
 0x6da   :  { %v410_v61 = vmul.f32 0.044715, %v402_v59  ;;  %v408_v22 = vmul.f32 0.5, %v402_v59 }
 0x6db   :  { %v404_v62 = vpop.f32.mrf.mxu0 }
 0x6dc   :  { %v412_v63 = vmul.f32 %v410_v61, %v402_v59  ;;  %v405_v2 = vadd.f32 %v404_v62, %v351_v57  ;;  %v538_v62 = vsub.s32 6, %v1860_v8 }
 0x6dd   :  { %v1611_v5 = vpop.f32.mrf.mxu0 }
 0x6de   :  { %v414_v6 = vmul.f32 %v412_v63, %v402_v59  ;;  %v411_v11 = vmul.f32 0.044715, %v405_v2  ;;  %v409_v23 = vmul.f32 0.5, %v405_v2  ;;  %v539_v5 = vrot.slane %v1866_v10, %v538_v62 }
 0x6e0   :  { %v416_v12 = vadd.f32 %v414_v6, %v402_v59  ;;  %v413_v13 = vmul.f32 %v411_v11, %v405_v2  ;;  %v544_v6 = vsub.s32 7, %v1860_v8 }
 0x6e2   :  { %v418_v14 = vmul.f32 0.7978846, %v416_v12  ;;  %v415_v15 = vmul.f32 %v413_v13, %v405_v2 }
 0x6e4   :  { %1756 = vtanh.f32 %v418_v14  ;;  %v417_v16 = vadd.f32 %v415_v15, %v405_v2  ;;  %v545_v14 = vrot.slane %v1866_v10, %v544_v6 }
 0x6e6   :  { %v419_v17 = vmul.f32 0.7978846, %v417_v16 }
 0x6e8   :  { %1758 = vtanh.f32 %v419_v17 }
 0x6f1   :  { %v1757_v18 = vpop.eup %1756 }
 0x6f2   :  { %v422_v19 = vadd.f32 1.0, %v1757_v18 }
 0x6f4   :  { %v424_v26 = vmul.f32 %v422_v19, %v408_v22  ;;  %v2009_v19 = vld [vmem:[%s2217_s6 + $0x8] sm:$0xff] }
 0x6f5   :  { %v1759_v20 = vpop.eup %1758  ;;  %v559_v10 = vrot.slane %v2009_v19, %v42_v9 }
 0x6f6   :  { %v423_v25 = vadd.f32 1.0, %v1759_v20 }
 0x6f8   :  { %v425_v28 = vmul.f32 %v423_v25, %v409_v23 }
 0x6fa   :  { %v426_v3 = vpack.c.bf16 %v425_v28, %v424_v26 }
 0x6fc   :  { %1621 = vmatmul.mubr.msk.bf16.vlgmr.msra.gmra.mxu1 %vm463_vm3, %v426_v3 }
 0x6fd   :  { %1640 = vmatprep.mubr.msk.bf16.mxu1 %vm1785_vm0, %v1784_v0 }
 0x7bc   :  { %v501_v4 = vpop.f32.mrf.mxu1 }
 0x7bd   :  { %v502_v31 = vadd.f32 %v501_v4, %v438_v30 }
 0x7be   :  { %v1622_v32 = vpop.f32.mrf.mxu1 }
 0x7bf   :  { %v508_v34 = vadd.f32 %v502_v31, %v341_v49 }
 0x7c0   :  { %v504_v35 = vpop.f32.mrf.mxu1 }
 0x7c1   :  { %v505_v36 = vadd.f32 %v504_v35, %v438_v30  ;;  %v510_v37 = vsel %vm56_vm1, %v508_v34, 0.0 }
 0x7c2   :  { %511 = vadd.xlane.f32.xlu1 %v510_v37  ;;  %v1623_v38 = vpop.f32.mrf.mxu1 }
 0x7c3   :  { %v509_v40 = vadd.f32 %v505_v36, %v342_v50  ;;  %v1734_v50 = vld [vmem:[%s2215_s2 + $0x18] sm:$0xff]  }
 0x7c4   :  { %1625 = vmatpush3.bf16.msra.mxu0 %v1734_v50 }
 0x7c5   :  { %v513_v41 = vsel %vm56_vm1, %v509_v40, 0.0  ;;  %1626 = vmatprep.subr.bf16.mxu0 %v1784_v0 }
 0x7c6   :  { %514 = vadd.xlane.f32.xlu0 %v513_v41 }
 0x7c8   :  { %1627 = vmatpush3.bf16.msra.mxu0 %v1735_v54 }
 0x7c9   :  { %1632 = vmatprep.subr.bf16.mxu0 %v1784_v0 }
 0x84b   :  { %v512_v42 = vpop.xlane.xlu1 %511 }
 0x84c   :  { %v516_v44 = vmul.f32 0.03125, %v512_v42 }
 0x84e   :  { %v518_v45 = vsub.f32 %v508_v34, %v516_v44 }
 0x84f   :  { %v515_v46 = vpop.xlane.xlu0 %514 }
 0x850   :  { %v517_v47 = vmul.f32 0.03125, %v515_v46  ;;  %v520_v48 = vmul.f32 %v518_v45, %v518_v45 }
 0x852   :  { %v519_v51 = vsub.f32 %v509_v40, %v517_v47  ;;  %v522_v52 = vsel %vm56_vm1, %v520_v48, 0.0 }
 0x853   :  { %523 = vadd.xlane.f32.xlu0 %v522_v52 }
 0x854   :  { %v521_v49 = vmul.f32 %v519_v51, %v519_v51 }
 0x856   :  { %v525_v53 = vsel %vm56_vm1, %v521_v49, 0.0 }
 0x857   :  { %526 = vadd.xlane.f32.xlu0 %v525_v53 }
 0x8dc   :  { %v524_v55 = vpop.xlane.xlu0 %523 }
 0x8dd   :  { %v528_v57 = vmul.f32 0.03125, %v524_v55 }
 0x8df   :  { %v530_v58 = vadd.f32 1e-12, %v528_v57 }
 0x8e0   :  { %v527_v59 = vpop.xlane.xlu0 %526 }
 0x8e1   :  { %1760 = vrsqrt.f32 %v530_v58  ;;  %v529_v60 = vmul.f32 0.03125, %v527_v59 }
 0x8e3   :  { %v531_v61 = vadd.f32 1e-12, %v529_v60 }
 0x8e5   :  { %1762 = vrsqrt.f32 %v531_v61 }
 0x8ee   :  { %v1761_v63 = vpop.eup %1760 }
 0x8ef   :  { %v534_v2 = vmul.f32 %v1761_v63, %v518_v45  ;;  %v1736_v63 = vld [vmem:[%s2219_s3 + $0x18] sm:$0xff]  }
 0x8f1   :  { %v540_v13 = vmul.f32 %v539_v5, %v534_v2  ;;  %v1737_v2 = vld [vmem:[%s2219_s3 + $0x10] sm:$0xff]  }
 0x8f2   :  { %v1763_v11 = vpop.eup %1762 }
 0x8f3   :  { %v535_v12 = vmul.f32 %v1763_v11, %v519_v51  ;;  %v1997_v16 = vadd.f32 %v545_v14, %v540_v13 }
 0x8f5   :  { %v541_v15 = vmul.f32 %v539_v5, %v535_v12 }
 0x8f7   :  { %v1999_v17 = vadd.f32 %v545_v14, %v541_v15  ;;  %v760_v15 = vrot.slane %v2009_v19, %v244_v1 }
 0x8f9   :  { %v550_v18 = vpack.c.bf16 %v1999_v17, %v1997_v16 }
 0x8fb   :  { %1629 = vmatmul.mubr.msk.bf16.vlgmr.msra.gmra.mxu0 %vm56_vm1, %v550_v18 }
 0x8fc   :  { %1634 = vmatprep.mubr.msk.bf16.mxu0 %vm1785_vm0, %v1784_v0 }
 0x9bb   :  { %v609_v20 = vpop.f32.mrf.mxu0 }
 0x9bc   :  { %v610_v25 = vadd.f32 %v609_v20, %v559_v10 }
 0x9bd   :  { %v1630_v22 = vpop.f32.mrf.mxu0 }
 0x9bf   :  { %v612_v23 = vpop.f32.mrf.mxu0 }
 0x9c0   :  { %v613_v26 = vadd.f32 %v612_v23, %v559_v10 }
 0x9c1   :  { %v1631_v28 = vpop.f32.mrf.mxu0 }
 0x9c2   :  { %v616_v3 = vpack.c.bf16 %v613_v26, %v610_v25  ;;  %624 = vperm.xlu1 %1723, %v613_v26  }
 0x9c4   :  { %630 = vrot.lane.b32.xlu0 %v616_v3, %s1787_s10 }
 0x9c8   :  { %619 = vperm.xlu0 %1722, %v610_v25  }
 0xa36   :  { %v631_v30 = vpop.permute.xlu0 %630 }
 0xa37   :  { %v636_v4 = vsel %vm56_vm1, %v631_v30, 0 }
 0xa38   :  { %1633 = vmatpush3.bf16.xpose.msra.mxu0 %v636_v4 }
 0xa39   :  { %1644 = vmatprep.subr.bf16.mxu0 %v1784_v0 }
 0xa3d   :  { %v625_v32 = vpop.permute.xlu1 %624 }
 0xa3e   :  { %v628_v37 = vmul.f32 %v1886_v24, %v625_v32 }
 0xa3f   :  { %1635 = vmatmul.mubr.msk.bf16.vlgmr.msra.gmra.mxu0 %vm56_vm1, %v616_v3 }
 0xa40   :  { %1648 = vmatprep.mubr.msk.bf16.mxu0 %vm1785_vm0, %v1784_v0  ;;  %1645 = vmatpush3.bf16.msra.mxu0 %v1736_v63 }
 0xa41   :  { %1646 = vmatprep.subr.bf16.mxu0 %v1784_v0 }
 0xa43   :  { %v620_v9 = vpop.permute.xlu0 %619 }
 0xa44   :  { %v627_v31 = vmul.f32 %v1880_v21, %v620_v9  ;;  %1647 = vmatpush3.bf16.msra.mxu0 %v1737_v2 }
 0xa45   :  { %1660 = vmatprep.subr.bf16.mxu0 %v1784_v0 }
 0xaff   :  { %v672_v34 = vpop.f32.mrf.mxu0 }
 0xb00   :  { %v673_v35 = vadd.f32 %v672_v34, %v627_v31 }
 0xb01   :  { %v1636_v36 = vpop.f32.mrf.mxu0 }
 0xb02   :  { %v679_v38 = vadd.f32 %v673_v35, %v1891_v27 }
 0xb03   :  { %v675_v40 = vpop.f32.mrf.mxu0 }
 0xb04   :  { %v676_v41 = vadd.f32 %v675_v40, %v628_v37  ;;  %v681_v42 = vsel %vm166_vm2, %v679_v38, -inf }
 0xb05   :  { %682 = vmax.xlane.f32.xlu0 %v681_v42  ;;  %v1637_v44 = vpop.f32.mrf.mxu0 }
 0xb06   :  { %v680_v45 = vadd.f32 %v676_v41, %v1898_v33 }
 0xb08   :  { %v684_v46 = vsel %vm166_vm2, %v680_v45, -inf }
 0xb09   :  { %685 = vmax.xlane.f32.xlu1 %v684_v46 }
 0xb8e   :  { %v683_v21 = vpop.xlane.xlu0 %682 }
 0xb8f   :  { %v687_v47 = vsub.f32 %v679_v38, %v683_v21  ;;  %v1739_v38 = vld [vmem:[%s2220_s4 + $0x10] sm:$0xff]  }
 0xb91   :  { %v689_v48 = vmul.f32 1.442695, %v687_v47 }
 0xb92   :  { %v686_v51 = vpop.xlane.xlu1 %685 }
 0xb93   :  { %1764 = vpow2.f32 %v689_v48  ;;  %v688_v52 = vsub.f32 %v680_v45, %v686_v51  ;;  %v848_v48 = vrot.slane %v2009_v19, %v333_v39  ;;  %v1740_v39 = vld [vmem:[%s2221_s5 + $0x38] sm:$0xff]  }
 0xb95   :  { %v691_v24 = vmul.f32 1.442695, %v688_v52 }
 0xb97   :  { %1766 = vpow2.f32 %v691_v24 }
 0xba0   :  { %v1765_v27 = vpop.eup %1764 }
 0xba1   :  { %v693_v49 = vsel %vm166_vm2, %v1765_v27, 0.0 }
 0xba2   :  { %694 = vadd.xlane.f32.xlu0 %v693_v49 }
 0xba4   :  { %v1767_v53 = vpop.eup %1766 }
 0xba5   :  { %v696_v50 = vsel %vm166_vm2, %v1767_v53, 0.0 }
 0xba6   :  { %697 = vadd.xlane.f32.xlu0 %v696_v50 }
 0xbbc   :  { %704 = vrot.lane.b32.xlu0 %v616_v3, %s1788_s1 }
 0xc2b   :  { %v695_v33 = vpop.xlane.xlu0 %694 }
 0xc2c   :  { %1768 = vrcp.f32 %v695_v33 }
 0xc2f   :  { %v698_v54 = vpop.xlane.xlu0 %697 }
 0xc30   :  { %1770 = vrcp.f32 %v698_v54  ;;  %v1741_v54 = vld [vmem:[%s2221_s5 + $0x30] sm:$0xff]  }
 0xc33   :  { %v705_v55 = vpop.permute.xlu0 %704 }
 0xc34   :  { %1639 = vmatpush3.bf16.msra.mxu1 %v705_v55  ;;  %v1743_v55 = vld [vmem:[%s2221_s5 + $0x20] sm:$0xff]  }
 0xc35   :  { %1652 = vmatprep.subr.bf16.mxu1 %v1784_v0 }
 0xc39   :  { %v1769_v57 = vpop.eup %1768 }
 0xc3a   :  { %v701_v59 = vmul.f32 %v1769_v57, %v1765_v27  ;;  %v854_v27 = vrot.slane %v2009_v19, %v339_v43  ;;  %v1742_v43 = vld [vmem:[%s2221_s5 + $0x28] sm:$0xff]   ;;  %v866_v57 = vrot.slane %v2009_v19, %v350_v56 }
 0xc3d   :  { %v1771_v58 = vpop.eup %1770 }
 0xc3e   :  { %v702_v60 = vmul.f32 %v1771_v58, %v1767_v53 }
 0xc40   :  { %v703_v61 = vpack.c.bf16 %v702_v60, %v701_v59 }
 0xc42   :  { %1641 = vmatmul.mubr.msk.bf16.vlgmr.msra.gmra.mxu1 %vm166_vm2, %v703_v61 }
 0xc43   :  { %1656 = vmatprep.mubr.msk.bf16.mxu1 %vm1785_vm0, %v1784_v0 }
 0xd02   :  { %v744_v5 = vpop.f32.mrf.mxu1 }
 0xd04   :  { %v1642_v11 = vpop.f32.mrf.mxu1 }
 0xd06   :  { %v747_v12 = vpop.f32.mrf.mxu1 }
 0xd07   :  { %v751_v13 = vpack.c.bf16 %v747_v12, %v744_v5 }
 0xd08   :  { %v1643_v14 = vpop.f32.mrf.mxu1 }
 0xd09   :  { %1649 = vmatmul.mubr.msk.bf16.vlgmr.msra.gmra.mxu0 %vm56_vm1, %v751_v13 }
 0xd0a   :  { %1668 = vmatprep.mubr.msk.bf16.mxu0 %vm1785_vm0, %v1784_v0  ;;  %1661 = vmatpush3.bf16.msra.mxu0 %v1740_v39 }
 0xd0b   :  { %1662 = vmatprep.subr.bf16.mxu0 %v1784_v0 }
 0xd0e   :  { %1663 = vmatpush3.bf16.msra.mxu0 %v1741_v54 }
 0xd0f   :  { %1664 = vmatprep.subr.bf16.mxu0 %v1784_v0 }
 0xd12   :  { %1665 = vmatpush3.bf16.msra.mxu0 %v1742_v43  ;;  %v1082_v43 = vadd.s32 32, %v1860_v8 }
 0xd13   :  { %1666 = vmatprep.subr.bf16.mxu0 %v1784_v0 }
 0xd16   :  { %1667 = vmatpush3.bf16.msra.mxu0 %v1743_v55 }
 0xd17   :  { %1694 = vmatprep.subr.mxu0 %v1784_v0 }
 0xdc9   :  { %v810_v18 = vpop.f32.mrf.mxu0 }
 0xdca   :  { %v811_v20 = vadd.f32 %v810_v18, %v760_v15 }
 0xdcb   :  { %v1650_v10 = vpop.f32.mrf.mxu0 }
 0xdcc   :  { %v817_v22 = vadd.f32 %v811_v20, %v1997_v16 }
 0xdcd   :  { %v813_v23 = vpop.f32.mrf.mxu0 }
 0xdce   :  { %v814_v25 = vadd.f32 %v813_v23, %v760_v15  ;;  %v819_v26 = vsel %vm56_vm1, %v817_v22, 0.0 }
 0xdcf   :  { %820 = vadd.xlane.f32.xlu1 %v819_v26  ;;  %v1651_v28 = vpop.f32.mrf.mxu0 }
 0xdd0   :  { %v818_v3 = vadd.f32 %v814_v25, %v1999_v17  ;;  %v1738_v17 = vld [vmem:[%s2220_s4 + $0x18] sm:$0xff]  }
 0xdd1   :  { %1653 = vmatpush3.bf16.msra.mxu1 %v1738_v17 }
 0xdd2   :  { %v822_v30 = vsel %vm56_vm1, %v818_v3, 0.0  ;;  %1654 = vmatprep.subr.bf16.mxu1 %v1784_v0 }
 0xdd3   :  { %823 = vadd.xlane.f32.xlu1 %v822_v30 }
 0xdd5   :  { %1655 = vmatpush3.bf16.msra.mxu1 %v1739_v38 }
 0xdd6   :  { %1672 = vmatprep.subr.mxu1 %v1784_v0 }
 0xe58   :  { %v821_v4 = vpop.xlane.xlu1 %820 }
 0xe59   :  { %v825_v9 = vmul.f32 0.03125, %v821_v4 }
 0xe5b   :  { %v827_v31 = vsub.f32 %v817_v22, %v825_v9 }
 0xe5c   :  { %v824_v1 = vpop.xlane.xlu1 %823 }
 0xe5d   :  { %v826_v32 = vmul.f32 0.03125, %v824_v1  ;;  %v829_v34 = vmul.f32 %v827_v31, %v827_v31 }
 0xe5f   :  { %v828_v35 = vsub.f32 %v818_v3, %v826_v32  ;;  %v831_v16 = vsel %vm56_vm1, %v829_v34, 0.0 }
 0xe60   :  { %832 = vadd.xlane.f32.xlu1 %v831_v16 }
 0xe61   :  { %v830_v36 = vmul.f32 %v828_v35, %v828_v35 }
 0xe63   :  { %v834_v37 = vsel %vm56_vm1, %v830_v36, 0.0 }
 0xe64   :  { %835 = vadd.xlane.f32.xlu0 %v834_v37 }
 0xee9   :  { %v833_v40 = vpop.xlane.xlu1 %832 }
 0xeea   :  { %v837_v41 = vmul.f32 0.03125, %v833_v40 }
 0xeec   :  { %v839_v42 = vadd.f32 1e-12, %v837_v41 }
 0xeed   :  { %v836_v44 = vpop.xlane.xlu0 %835 }
 0xeee   :  { %1772 = vrsqrt.f32 %v839_v42  ;;  %v838_v45 = vmul.f32 0.03125, %v836_v44 }
 0xef0   :  { %v840_v46 = vadd.f32 1e-12, %v838_v45 }
 0xef2   :  { %1774 = vrsqrt.f32 %v840_v46 }
 0xefb   :  { %v1773_v21 = vpop.eup %1772 }
 0xefc   :  { %v843_v47 = vmul.f32 %v1773_v21, %v827_v31  ;;  %v954_v31 = vrot.slane %v2009_v19, %v437_v29 }
 0xefe   :  { %v849_v24 = vmul.f32 %v848_v48, %v843_v47 }
 0xeff   :  { %v1775_v51 = vpop.eup %1774 }
 0xf00   :  { %v844_v52 = vmul.f32 %v1775_v51, %v828_v35  ;;  %v855_v53 = vadd.f32 %v854_v27, %v849_v24  ;;  %v2111_v24 = vadd.s32 24, %v1860_v8 }
 0xf02   :  { %v850_v49 = vmul.f32 %v848_v48, %v844_v52  ;;  %v2108_v52 = vand.u32 127, %v40_v7  ;;  %v1247_v7 = vadd.s32 64, %v2111_v24 }
 0xf04   :  { %v856_v50 = vadd.f32 %v854_v27, %v850_v49  ;;  %v1085_v27 = vadd.s32 32, %v2111_v24  ;;  %v2115_v49 = vadd.s32 16, %v1860_v8  ;;  %vm1251_vm6 = vcmp.eq.s32.totalorder %v2108_v52, %v1247_v7 }
 0xf05   :  { %vm1086_vm9 = vcmp.eq.s32.totalorder %v2108_v52, %v1082_v43  ;;  %vm1073_vm11 = vcmp.eq.s32.totalorder %v2108_v52, %v2111_v24 }
 0xf06   :  { %v857_v33 = vpack.c.bf16 %v856_v50, %v855_v53  ;;  %vm1089_vm4 = vcmp.eq.s32.totalorder %v2108_v52, %v1085_v27  ;;  %v1246_v54 = vadd.s32 64, %v2115_v49  ;;  %vm1072_vm13 = vcmp.eq.s32.totalorder %v2108_v52, %v2115_v49 }
 0xf08   :  { %1657 = vmatmul.mubr.msk.bf16.vlgmr.msra.gmra.mxu1 %vm56_vm1, %v857_v33  ;;  %v1789_v33 = vmov 1.0   ;;  %vm1250_vm8 = vcmp.eq.s32.totalorder %v2108_v52, %v1246_v54 }
 0xf09   :  { %1680 = vmatprep.mubr.msk.f32.mxu1 %vm1785_vm0, %v1784_v0  ;;  %1673 = vmatpush3.msk.msra.mxu1 %vm1089_vm4, %v1789_v33  ;;  %vm1070_vm4 = vcmp.eq.s32.totalorder %v2108_v52, %v1860_v8 }
 0xf0a   :  { %1674 = vmatprep.subr.mxu1 %v1784_v0 }
 0xfc8   :  { %v916_v58 = vpop.f32.mrf.mxu1 }
 0xfc9   :  { %v917_v59 = vadd.f32 %v916_v58, %v866_v57  ;;  %v1337_v58 = vadd.s32 96, %v2111_v24 }
 0xfca   :  { %v1658_v60 = vpop.f32.mrf.mxu1 }
 0xfcb   :  { %v925_v61 = vmul.f32 0.044715, %v917_v59  ;;  %v923_v26 = vmul.f32 0.5, %v917_v59  ;;  %vm1341_vm15 = vcmp.eq.s32.totalorder %v2108_v52, %v1337_v58 }
 0xfcc   :  { %v919_v63 = vpop.f32.mrf.mxu1 }
 0xfcd   :  { %v927_v2 = vmul.f32 %v925_v61, %v917_v59  ;;  %v920_v5 = vadd.f32 %v919_v63, %v866_v57  ;;  %v1244_v57 = vadd.s32 64, %v1860_v8 }
 0xfce   :  { %v1659_v11 = vpop.f32.mrf.mxu1 }
 0xfcf   :  { %v929_v12 = vmul.f32 %v927_v2, %v917_v59  ;;  %v926_v13 = vmul.f32 0.044715, %v920_v5  ;;  %v924_v28 = vmul.f32 0.5, %v920_v5  ;;  %vm1248_vm12 = vcmp.eq.s32.totalorder %v2108_v52, %v1244_v57 }
 0xfd1   :  { %v931_v14 = vadd.f32 %v929_v12, %v917_v59  ;;  %v928_v15 = vmul.f32 %v926_v13, %v920_v5  ;;  %v1336_v59 = vadd.s32 96, %v2115_v49  ;;  %v1054_v13 = vrot.slane %v2009_v19, %v538_v62 }
 0xfd2   :  { %v1334_v62 = vadd.s32 96, %v1860_v8 }
 0xfd3   :  { %v933_v18 = vmul.f32 0.7978846, %v931_v14  ;;  %v930_v20 = vmul.f32 %v928_v15, %v920_v5  ;;  %vm1340_vm2 = vcmp.eq.s32.totalorder %v2108_v52, %v1336_v59 }
 0xfd5   :  { %1776 = vtanh.f32 %v933_v18  ;;  %v932_v10 = vadd.f32 %v930_v20, %v920_v5  ;;  %v1060_v18 = vrot.slane %v2009_v19, %v544_v6 }
 0xfd7   :  { %v934_v22 = vmul.f32 0.7978846, %v932_v10 }
 0xfd9   :  { %1778 = vtanh.f32 %v934_v22 }
 0xfe2   :  { %v1777_v23 = vpop.eup %1776 }
 0xfe3   :  { %v937_v56 = vadd.f32 1.0, %v1777_v23 }
 0xfe5   :  { %v939_v30 = vmul.f32 %v937_v56, %v923_v26 }
 0xfe6   :  { %v1779_v25 = vpop.eup %1778 }
 0xfe7   :  { %v938_v3 = vadd.f32 1.0, %v1779_v25 }
 0xfe9   :  { %v940_v4 = vmul.f32 %v938_v3, %v924_v28 }
 0xfeb   :  { %v941_v9 = vpack.c.bf16 %v940_v4, %v939_v30 }
 0xfed   :  { %1669 = vmatmul.mubr.msk.bf16.vlgmr.msra.gmra.mxu0 %vm463_vm3, %v941_v9 }
 0xfee   :  { %1702 = vmatprep.mubr.msk.f32.mxu0 %vm1785_vm0, %v1784_v0  ;;  %1695 = vmatpush3.msk.msra.mxu0 %vm1251_vm6, %v1789_v33 }
 0xfef   :  { %1696 = vmatprep.subr.mxu0 %v1784_v0 }
 0xff0   :  { %1697 = vmatpush3.msk.msra.mxu0 %vm1250_vm8, %v1789_v33 }
 0xff1   :  { %1698 = vmatprep.subr.mxu0 %v1784_v0 }
0x10ad   :  { %v1016_v1 = vpop.f32.mrf.mxu0 }
0x10ae   :  { %v1017_v32 = vadd.f32 %v1016_v1, %v954_v31 }
0x10af   :  { %v1670_v34 = vpop.f32.mrf.mxu0 }
0x10b0   :  { %v1023_v35 = vadd.f32 %v1017_v32, %v855_v53  ;;  %v1084_v53 = vadd.s32 32, %v2115_v49 }
0x10b1   :  { %v1019_v16 = vpop.f32.mrf.mxu0 }
0x10b2   :  { %v1020_v36 = vadd.f32 %v1019_v16, %v954_v31  ;;  %v1025_v37 = vsel %vm56_vm1, %v1023_v35, 0.0  ;;  %vm1088_vm5 = vcmp.eq.s32.totalorder %v2108_v52, %v1084_v53 }
0x10b3   :  { %1026 = vadd.xlane.f32.xlu1 %v1025_v37  ;;  %v1671_v17 = vpop.f32.mrf.mxu0  ;;  %1675 = vmatpush3.msk.msra.mxu1 %vm1088_vm5, %v1789_v33  ;;  %vm1338_vm5 = vcmp.eq.s32.totalorder %v2108_v52, %v1334_v62 }
0x10b4   :  { %v1024_v38 = vadd.f32 %v1020_v36, %v856_v50  ;;  %v2120_v50 = vadd.s32 8, %v1860_v8  ;;  %1676 = vmatprep.subr.mxu1 %v1784_v0 }
0x10b6   :  { %v1028_v40 = vsel %vm56_vm1, %v1024_v38, 0.0  ;;  %v1083_v39 = vadd.s32 32, %v2120_v50  ;;  %v1245_v55 = vadd.s32 64, %v2120_v50  ;;  %vm1071_vm14 = vcmp.eq.s32.totalorder %v2108_v52, %v2120_v50 }
0x10b7   :  { %1029 = vadd.xlane.f32.xlu1 %v1028_v40  ;;  %v1335_v60 = vadd.s32 96, %v2120_v50 }
0x10b8   :  { %vm1087_vm7 = vcmp.eq.s32.totalorder %v2108_v52, %v1083_v39  ;;  %vm1249_vm10 = vcmp.eq.s32.totalorder %v2108_v52, %v1245_v55 }
0x10b9   :  { %1677 = vmatpush3.msk.msra.mxu1 %vm1087_vm7, %v1789_v33  ;;  %1699 = vmatpush3.msk.msra.mxu0 %vm1249_vm10, %v1789_v33  ;;  %vm1339_vm3 = vcmp.eq.s32.totalorder %v2108_v52, %v1335_v60 }
0x10ba   :  { %1678 = vmatprep.subr.mxu1 %v1784_v0  ;;  %1700 = vmatprep.subr.mxu0 %v1784_v0 }
0x10bb   :  { %1679 = vmatpush3.msk.msra.mxu1 %vm1086_vm9, %v1789_v33  ;;  %1701 = vmatpush3.msk.msra.mxu0 %vm1248_vm12, %v1789_v33 }
0x10bc   :  { %1683 = vmatprep.subr.mxu1 %v1784_v0 }
0x113c   :  { %v1027_v41 = vpop.xlane.xlu1 %1026 }
0x113d   :  { %v1031_v42 = vmul.f32 0.03125, %v1027_v41 }
0x113f   :  { %v2097_v44 = vsub.f32 %v1023_v35, %v1031_v42 }
0x1140   :  { %v1030_v45 = vpop.xlane.xlu1 %1029 }
0x1141   :  { %v1032_v29 = vmul.f32 0.03125, %v1030_v45  ;;  %v1035_v46 = vmul.f32 %v2097_v44, %v2097_v44 }
0x1143   :  { %v2101_v21 = vsub.f32 %v1024_v38, %v1032_v29  ;;  %v1037_v47 = vsel %vm56_vm1, %v1035_v46, 0.0 }
0x1144   :  { %1038 = vadd.xlane.f32.xlu1 %v1037_v47 }
0x1145   :  { %v1036_v48 = vmul.f32 %v2101_v21, %v2101_v21 }
0x1147   :  { %v1040_v51 = vsel %vm56_vm1, %v1036_v48, 0.0 }
0x1148   :  { %1041 = vadd.xlane.f32.xlu1 %v1040_v51 }
0x11cd   :  { %v1039_v61 = vpop.xlane.xlu1 %1038 }
0x11ce   :  { %v1043_v63 = vmul.f32 0.03125, %v1039_v61 }
0x11d0   :  { %v1045_v2 = vadd.f32 1e-12, %v1043_v63 }
0x11d1   :  { %v1042_v5 = vpop.xlane.xlu1 %1041 }
0x11d2   :  { %1780 = vrsqrt.f32 %v1045_v2  ;;  %v1044_v11 = vmul.f32 0.03125, %v1042_v5 }
0x11d4   :  { %v1046_v12 = vadd.f32 1e-12, %v1044_v11 }
0x11d6   :  { %1782 = vrsqrt.f32 %v1046_v12 }
0x11df   :  { %v1781_v14 = vpop.eup %1780 }
0x11e0   :  { %v1049_v15 = vmul.f32 %v1781_v14, %v2097_v44 }
0x11e2   :  { %v1055_v20 = vmul.f32 %v1054_v13, %v1049_v15 }
0x11e3   :  { %v1783_v10 = vpop.eup %1782 }
0x11e4   :  { %v1050_v22 = vmul.f32 %v1783_v10, %v2101_v21  ;;  %v1061_v23 = vadd.f32 %v1060_v18, %v1055_v20 }
0x11e6   :  { %v1099_v56 = vrot.slane %v1061_v23, 4  ;;  %v1056_v25 = vmul.f32 %v1054_v13, %v1050_v22 }
0x11e8   :  { %1681 = vmatmul.mubr.msk.f32.vlgmr.msra.gmra.mxu1 %vm56_vm1, %v1099_v56  ;;  %v1062_v26 = vadd.f32 %v1060_v18, %v1056_v25 }
0x11e9   :  { %1684 = vmatpush3.msk.msra.mxu1 %vm1073_vm11, %v1789_v33  ;;  %1691 = vmatprep.mubr.msk.f32.mxu1 %vm1785_vm0, %v1784_v0 }
0x11ea   :  { %1685 = vmatprep.subr.mxu1 %v1784_v0  ;;  %1703 = vmatmul.mubr.msk.f32.vlgmr.msra.gmra.mxu0 %vm56_vm1, %v1062_v26  ;;  %v1350_v8 = vrot.slane %v1062_v26, 4 }
0x11eb   :  { %1686 = vmatpush3.msk.msra.mxu1 %vm1072_vm13, %v1789_v33 }
0x11ec   :  { %1687 = vmatprep.subr.mxu1 %v1784_v0 }
0x11ed   :  { %1688 = vmatpush3.msk.msra.mxu1 %vm1071_vm14, %v1789_v33 }
0x11ee   :  { %1689 = vmatprep.subr.mxu1 %v1784_v0 }
0x11ef   :  { %1690 = vmatpush3.msk.msra.mxu1 %vm1070_vm4, %v1789_v33 }
0x11f0   :  { %1692 = vmatmul.mubr.msk.f32.vlgmr.msra.gmra.mxu1 %vm56_vm1, %v1061_v23  ;;  %1705 = vmatprep.subr.mxu1 %v1784_v0 }
0x11f1   :  { %1706 = vmatpush3.msk.msra.mxu1 %vm1341_vm15, %v1789_v33  ;;  %1713 = vmatprep.mubr.msk.f32.mxu1 %vm1785_vm0, %v1784_v0 }
0x11f2   :  { %1707 = vmatprep.subr.mxu1 %v1784_v0 }
0x11f3   :  { %1708 = vmatpush3.msk.msra.mxu1 %vm1340_vm2, %v1789_v33 }
0x11f4   :  { %1709 = vmatprep.subr.mxu1 %v1784_v0 }
0x11f5   :  { %1710 = vmatpush3.msk.msra.mxu1 %vm1339_vm3, %v1789_v33 }
0x11f6   :  { %1711 = vmatprep.subr.mxu1 %v1784_v0 }
0x11f7   :  { %1712 = vmatpush3.msk.msra.mxu1 %vm1338_vm5, %v1789_v33 }
0x11f8   :  { %1714 = vmatmul.mubr.msk.f32.vlgmr.msra.gmra.mxu1 %vm56_vm1, %v1350_v8 }
0x12a8   :  { %v1168_v6 = vpop.f32.mrf.mxu1 }
0x12aa   :  { %v1682_v19 = vpop.f32.mrf.mxu1  ;;  %v1329_v28 = vpop.f32.mrf.mxu0 }
0x12ac   :  { %v1704_v3 = vpop.f32.mrf.mxu0 }
0x12b0   :  { %v1240_v30 = vpop.f32.mrf.mxu1 }
0x12b1   :  { %v1241_v9 = vadd.f32 %v1240_v30, %v1168_v6 }
0x12b2   :  { %v1693_v4 = vpop.f32.mrf.mxu1 }
0x12b3   :  { %v1333_v31 = vadd.f32 %v1329_v28, %v1241_v9 }
0x12b8   :  { %v1419_v1 = vpop.f32.mrf.mxu1 }
0x12b9   :  { %v1423_v32 = vadd.f32 %v1419_v1, %v1333_v31 }
0x12ba   :  { %v1715_v34 = vpop.f32.mrf.mxu1 }
0x12bb   :  { %1424 = vst [vmem:[%s2222_s7] sm:$0xf] %v1423_v32 }

</bundles_post_ra>
